<compile_context>
chip_gen: v7x
topology: tpu7x:2x2x1
jax: 0.10.0
libtpu: 0.0.40
codegen_flags: <defaults>
</compile_context>

<pallas_src>
import jax
import jax.numpy as jnp
from jax.experimental import pallas as pl
from jax.experimental.pallas import tpu as pltpu

LEAKY_SLOPE = 0.01
BN_EPS = 1e-5


# ---------------------------------------------------------------------------
# Small helpers
# ---------------------------------------------------------------------------
def _round_up(x, m):
    return ((x + m - 1) // m) * m


def _nbytes(shape, dtype):
    n = 1
    for d in shape:
        n *= int(d)
    return n * jnp.dtype(dtype).itemsize


def _bn_fold(gamma, beta, mean, var):
    scale = gamma / jnp.sqrt(var + BN_EPS)
    bias = beta - mean * scale
    return scale.astype(jnp.float32), bias.astype(jnp.float32)


def _make_phases(x_nhwc, s):
    """Zero-pad (pad=1) and polyphase-split the NHWC input so every 3x3 tap of
    a stride-s conv is a unit-stride, statically offset slice inside the
    kernel.  Returns (B, s*s*Hq, Wq, C): phase p = (dh%s)*s + (dw%s) occupies
    rows [p*Hq, (p+1)*Hq)."""
    B, H, W, C = x_nhwc.shape
    Hp = _round_up(H + 2, s)
    Wp = _round_up(W + 2, s)
    xp = jnp.pad(x_nhwc, ((0, 0), (1, Hp - H - 1), (1, Wp - W - 1), (0, 0)))
    Hq, Wq = Hp // s, Wp // s
    ph = xp.reshape(B, Hq, s, Wq, s, C)
    ph = jnp.transpose(ph, (0, 2, 4, 1, 3, 5))            # (B, s, s, Hq, Wq, C)
    return ph.reshape(B, s * s * Hq, Wq, C), Hq, Wq


# ---------------------------------------------------------------------------
# Fused residual-block kernel
# ---------------------------------------------------------------------------
def _make_block_kernel(s, Hq, Ho, Wo, Cin, Cout, has_proj):
    M = Ho * Wo

    def kernel(*refs):
        if has_proj:
            x_ref, w1_ref, b1_ref, w2_ref, b2_ref, ws_ref, o_ref, h_ref = refs
        else:
            x_ref, w1_ref, b1_ref, w2_ref, b2_ref, o_ref, h_ref = refs
            ws_ref = None

        def x_slab(dh, dw):
            # unit-stride slice of the polyphase-packed, zero-padded input
            r0 = ((dh % s) * s + (dw % s)) * Hq + dh // s
            c0 = dw // s
            return x_ref[0, r0:r0 + Ho, c0:c0 + Wo, :]

        # ---- conv1 (3x3, stride s) + folded BN1 + LeakyReLU, all in VMEM ----
        acc1 = None
        for dh in range(3):
            for dw in range(3):
                slab = x_slab(dh, dw).reshape(M, Cin).astype(jnp.bfloat16)
                c = jnp.dot(slab, w1_ref[dh, dw],
                            preferred_element_type=jnp.float32)
                acc1 = c if acc1 is None else acc1 + c
        y1 = acc1 + b1_ref[...]
        y1 = jnp.where(y1 >= 0, y1, LEAKY_SLOPE * y1)

        # stage conv1 output (bf16, zero-padded halo) in VMEM scratch for conv2
        h_ref[...] = jnp.zeros_like(h_ref)
        h_ref[1:Ho + 1, 1:Wo + 1, :] = (
            y1.reshape(Ho, Wo, Cout).astype(jnp.bfloat16))

        # ---- conv2 (3x3, stride 1) + folded BN2 ----
        acc2 = None
        for dh in range(3):
            for dw in range(3):
                slab = h_ref[dh:dh + Ho, dw:dw + Wo, :].reshape(M, Cout)
                c = jnp.dot(slab, w2_ref[dh, dw],
                            preferred_element_type=jnp.float32)
                acc2 = c if acc2 is None else acc2 + c
        y2 = acc2 + b2_ref[...]           # includes shortcut-BN bias if proj

        # ---- shortcut ----
        if has_proj:
            # 1x1 conv, stride s  ==  the (dh,dw)=(1,1) tap slab
            xs = x_slab(1, 1).reshape(M, Cin).astype(jnp.bfloat16)
            y2 = y2 + jnp.dot(xs, ws_ref[...],
                              preferred_element_type=jnp.float32)
        else:
            # identity residual, added in f32 (no bf16 rounding)
            y2 = y2 + x_slab(1, 1).reshape(M, Cin)

        y2 = jnp.where(y2 >= 0, y2, LEAKY_SLOPE * y2)
        o_ref[0, :, :, :] = y2.reshape(Ho, Wo, Cout)

    return kernel


def _residual_block_pallas(x_ph, w1f, b1, w2f, b2, wsf, s, Hq, Ho, Wo):
    B, HP, Wq, Cin = x_ph.shape
    Cout = w1f.shape[-1]
    has_proj = wsf is not None

    kernel = _make_block_kernel(s, Hq, Ho, Wo, Cin, Cout, has_proj)

    in_specs = [
        pl.BlockSpec((1, HP, Wq, Cin), lambda b: (b, 0, 0, 0)),
        pl.BlockSpec((3, 3, Cin, Cout), lambda b: (0, 0, 0, 0)),
        pl.BlockSpec((1, Cout), lambda b: (0, 0)),
        pl.BlockSpec((3, 3, Cout, Cout), lambda b: (0, 0, 0, 0)),
        pl.BlockSpec((1, Cout), lambda b: (0, 0)),
    ]
    args = [x_ph, w1f, b1, w2f, b2]
    if has_proj:
        in_specs.append(pl.BlockSpec((Cin, Cout), lambda b: (0, 0)))
        args.append(wsf)

    out_spec = pl.BlockSpec((1, Ho, Wo, Cout), lambda b: (b, 0, 0, 0))
    scratch = [pltpu.VMEM((Ho + 2, Wo + 2, Cout), jnp.bfloat16)]

    # Generation-aware VMEM budget: sized from the actual (double-buffered)
    # blocks, capped well below v7x's 64 MiB per-TensorCore capacity.
    block_bytes = (
        _nbytes((1, HP, Wq, Cin), x_ph.dtype)
        + _nbytes((3, 3, Cin, Cout), jnp.bfloat16)
        + _nbytes((3, 3, Cout, Cout), jnp.bfloat16)
        + 2 * _nbytes((1, Cout), jnp.float32)
        + (_nbytes((Cin, Cout), jnp.bfloat16) if has_proj else 0)
        + _nbytes((1, Ho, Wo, Cout), jnp.float32))
    needed = 2 * block_bytes + _nbytes((Ho + 2, Wo + 2, Cout), jnp.bfloat16)
    vmem_limit = int(min(max(needed + (4 << 20), 8 << 20), 48 << 20))

    flops = B * Ho * Wo * (2 * 9 * Cin * Cout + 2 * 9 * Cout * Cout
                           + (2 * Cin * Cout if has_proj else 0))
    bytes_accessed = int(
        x_ph.size * x_ph.dtype.itemsize
        + sum(a.size * a.dtype.itemsize for a in args[1:])
        + B * Ho * Wo * Cout * 4)

    return pl.pallas_call(
        kernel,
        out_shape=jax.ShapeDtypeStruct((B, Ho, Wo, Cout), jnp.float32),
        grid_spec=pltpu.PrefetchScalarGridSpec(
            num_scalar_prefetch=0,
            grid=(B,),
            in_specs=in_specs,
            out_specs=out_spec,
            scratch_shapes=scratch,
        ),
        compiler_params=pltpu.CompilerParams(
            dimension_semantics=("parallel",),
            vmem_limit_bytes=vmem_limit,
        ),
        cost_estimate=pl.CostEstimate(flops=flops, transcendentals=0,
                                      bytes_accessed=bytes_accessed),
    )(*args)


# ---------------------------------------------------------------------------
# ResidualBlock forward (Pallas-backed)
# ---------------------------------------------------------------------------
def residual_block_forward(x_nchw, params, stride):
    x = jnp.transpose(x_nchw, (0, 2, 3, 1)).astype(jnp.float32)  # NCHW -> NHWC
    B, H, W, Cin = x.shape
    Cout = params["w1"].shape[-1]
    Ho = (H - 1) // stride + 1
    Wo = (W - 1) // stride + 1
    need_proj = (stride != 1) or (Cin != Cout)

    # Fold BN (inference / running stats) into the conv weights at trace time.
    s1, b1 = _bn_fold(*params["bn1"])
    s2, b2 = _bn_fold(*params["bn2"])
    w1f = (params["w1"] * s1).astype(jnp.bfloat16)           # (3,3,Cin,Cout)
    w2f = (params["w2"] * s2).astype(jnp.bfloat16)           # (3,3,Cout,Cout)
    if need_proj:
        ss, bs = _bn_fold(*params["bns"])
        wsf = (params["ws"].reshape(Cin, Cout) * ss).astype(jnp.bfloat16)
        b2_tot = (b2 + bs).reshape(1, Cout)
        x_in = x.astype(jnp.bfloat16)     # residual goes through the MXU anyway
    else:
        wsf = None
        b2_tot = b2.reshape(1, Cout)
        x_in = x                          # keep f32 for an exact residual add

    x_ph, Hq, _ = _make_phases(x_in, stride)
    out = _residual_block_pallas(x_ph, w1f, b1.reshape(1, Cout), w2f, b2_tot,
                                 wsf, stride, Hq, Ho, Wo)
    return jnp.transpose(out, (0, 3, 1, 2))                  # NHWC -> NCHW


# ---------------------------------------------------------------------------
# Pure-JAX reference (matches PyTorch forward in eval mode) for verification
# ---------------------------------------------------------------------------
def _reference_forward(x, params, stride):
    def conv(x, w_hwio, s, pad):
        return jax.lax.conv_general_dilated(
            x, w_hwio, (s, s), [(pad, pad), (pad, pad)],
            dimension_numbers=("NCHW", "HWIO", "NCHW"),
            precision=jax.lax.Precision.HIGHEST)

    def bn(x, stats):
        g, b, m, v = stats
        g, b, m, v = (a[None, :, None, None] for a in (g, b, m, v))
        return (x - m) / jnp.sqrt(v + BN_EPS) * g + b

    def lrelu(y):
        return jnp.where(y >= 0, y, LEAKY_SLOPE * y)

    out = lrelu(bn(conv(x, params["w1"], stride, 1), params["bn1"]))
    out = bn(conv(out, params["w2"], 1, 1), params["bn2"])
    if stride != 1 or params["w1"].shape[2] != params["w1"].shape[3]:
        sc = bn(conv(x, params["ws"], stride, 0), params["bns"])
    else:
        sc = x
    return lrelu(out + sc)


# ---------------------------------------------------------------------------
if __name__ == "__main__":
    key = jax.random.PRNGKey(0)

    def bn_params(k, c):
        k0, k1, k2, k3 = jax.random.split(k, 4)
        gamma = 1.0 + 0.1 * jax.random.normal(k0, (c,), jnp.float32)
        beta = 0.1 * jax.random.normal(k1, (c,), jnp.float32)
        mean = 0.1 * jax.random.normal(k2, (c,), jnp.float32)
        var = jax.random.uniform(k3, (c,), jnp.float32, 0.5, 1.5)
        return (gamma, beta, mean, var)

    def make_params(k, cin, cout, need_proj):
        ks = jax.random.split(k, 8)
        p = {
            # conv weights stored as HWIO = (kh, kw, Cin, Cout)
            "w1": 0.1 * jax.random.normal(ks[0], (3, 3, cin, cout), jnp.float32),
            "w2": 0.1 * jax.random.normal(ks[1], (3, 3, cout, cout), jnp.float32),
            "bn1": bn_params(ks[3], cout),
            "bn2": bn_params(ks[4], cout),
        }
        if need_proj:
            p["ws"] = 0.1 * jax.random.normal(ks[2], (1, 1, cin, cout), jnp.float32)
            p["bns"] = bn_params(ks[5], cout)
        return p

    fwd = jax.jit(residual_block_forward, static_argnums=2)

    # Case 1: projection shortcut (stride=2, Cin != Cout)
    k1, k2, k3, k4 = jax.random.split(key, 4)
    B, Cin, Cout, H, W, stride = 2, 4, 8, 16, 16, 2
    params = make_params(k1, Cin, Cout, need_proj=True)
    x = jax.random.normal(k2, (B, Cin, H, W), jnp.float32)
    out = jax.block_until_ready(fwd(x, params, stride))
    ref = _reference_forward(x, params, stride)
    assert out.shape == (B, Cout, H // stride, W // stride), out.shape
    err1 = float(jnp.max(jnp.abs(out - ref)))
    assert err1 < 3e-2, f"projection-shortcut max abs error {err1}"

    # Case 2: identity shortcut (stride=1, Cin == Cout)
    B, Cin, Cout, H, W, stride = 2, 8, 8, 16, 16, 1
    params = make_params(k3, Cin, Cout, need_proj=False)
    x = jax.random.normal(k4, (B, Cin, H, W), jnp.float32)
    out = jax.block_until_ready(fwd(x, params, stride))
    ref = _reference_forward(x, params, stride)
    assert out.shape == (B, Cout, H, W), out.shape
    err2 = float(jnp.max(jnp.abs(out - ref)))
    assert err2 < 3e-2, f"identity-shortcut max abs error {err2}"

    print("KERNEL_OK")
</pallas_src>

<mosaic_0001>
module attributes {stable_mosaic.version = 11 : i64} {
  func.func @kernel(%arg0: i32, %arg1: memref<1x36x9x4xbf16, #tpu.memory_space<vmem>>, %arg2: memref<3x3x4x8xbf16, #tpu.memory_space<vmem>>, %arg3: memref<1x8xf32, #tpu.memory_space<vmem>>, %arg4: memref<3x3x8x8xbf16, #tpu.memory_space<vmem>>, %arg5: memref<1x8xf32, #tpu.memory_space<vmem>>, %arg6: memref<4x8xbf16, #tpu.memory_space<vmem>>, %arg7: memref<1x8x8x8xf32, #tpu.memory_space<vmem>>, %arg8: memref<10x10x8xbf16, #tpu.memory_space<vmem>>) attributes {dimension_semantics = [#tpu.dimension_semantics<parallel>], iteration_bounds = array<i64: 2>, scalar_prefetch = 0 : i64, scratch_operands = 1 : i64, tpu.core_type = #tpu.core_type<tc>, window_params = [{transform_indices = @transform_0, window_bounds = array<i64: 1, 36, 9, 4>}, {pipeline_mode = #tpu.pipeline_mode<synchronous>, transform_indices = @transform_1, window_bounds = array<i64: 3, 3, 4, 8>}, {pipeline_mode = #tpu.pipeline_mode<synchronous>, transform_indices = @transform_2, window_bounds = array<i64: 1, 8>}, {pipeline_mode = #tpu.pipeline_mode<synchronous>, transform_indices = @transform_3, window_bounds = array<i64: 3, 3, 8, 8>}, {pipeline_mode = #tpu.pipeline_mode<synchronous>, transform_indices = @transform_4, window_bounds = array<i64: 1, 8>}, {pipeline_mode = #tpu.pipeline_mode<synchronous>, transform_indices = @transform_5, window_bounds = array<i64: 4, 8>}, {transform_indices = @transform_6, window_bounds = array<i64: 1, 8, 8, 8>}]} {
    %c0 = arith.constant 0 : index
    %c0_0 = arith.constant 0 : index
    %c0_1 = arith.constant 0 : index
    %c0_2 = arith.constant 0 : index
    %0 = vector.load %arg1[%c0, %c0_0, %c0_1, %c0_2] : memref<1x36x9x4xbf16, #tpu.memory_space<vmem>>, vector<1x8x8x4xbf16>
    %1 = vector.shape_cast %0 : vector<1x8x8x4xbf16> to vector<8x8x4xbf16>
    %2 = vector.shape_cast %1 : vector<8x8x4xbf16> to vector<64x4xbf16>
    %c0_3 = arith.constant 0 : index
    %c0_4 = arith.constant 0 : index
    %c0_5 = arith.constant 0 : index
    %c0_6 = arith.constant 0 : index
    %3 = vector.load %arg2[%c0_3, %c0_4, %c0_5, %c0_6] : memref<3x3x4x8xbf16, #tpu.memory_space<vmem>>, vector<1x1x4x8xbf16>
    %4 = vector.shape_cast %3 : vector<1x1x4x8xbf16> to vector<4x8xbf16>
    %cst = arith.constant dense<0.000000e+00> : vector<64x8xf32>
    %5 = tpu.matmul %2, %4, %cst {dimension_numbers = #tpu.dot_dimension_numbers<[1], [0], [0], [1], [0, 0, 1, 1], [], []>} : vector<64x4xbf16>, vector<4x8xbf16>, vector<64x8xf32> -> vector<64x8xf32>
    %c0_7 = arith.constant 0 : index
    %c9 = arith.constant 9 : index
    %c0_8 = arith.constant 0 : index
    %c0_9 = arith.constant 0 : index
    %6 = vector.load %arg1[%c0_7, %c9, %c0_8, %c0_9] : memref<1x36x9x4xbf16, #tpu.memory_space<vmem>>, vector<1x8x8x4xbf16>
    %7 = vector.shape_cast %6 : vector<1x8x8x4xbf16> to vector<8x8x4xbf16>
    %8 = vector.shape_cast %7 : vector<8x8x4xbf16> to vector<64x4xbf16>
    %c0_10 = arith.constant 0 : index
    %c1 = arith.constant 1 : index
    %c0_11 = arith.constant 0 : index
    %c0_12 = arith.constant 0 : index
    %9 = vector.load %arg2[%c0_10, %c1, %c0_11, %c0_12] : memref<3x3x4x8xbf16, #tpu.memory_space<vmem>>, vector<1x1x4x8xbf16>
    %10 = vector.shape_cast %9 : vector<1x1x4x8xbf16> to vector<4x8xbf16>
    %cst_13 = arith.constant dense<0.000000e+00> : vector<64x8xf32>
    %11 = tpu.matmul %8, %10, %cst_13 {dimension_numbers = #tpu.dot_dimension_numbers<[1], [0], [0], [1], [0, 0, 1, 1], [], []>} : vector<64x4xbf16>, vector<4x8xbf16>, vector<64x8xf32> -> vector<64x8xf32>
    %12 = arith.addf %5, %11 : vector<64x8xf32>
    %c0_14 = arith.constant 0 : index
    %c0_15 = arith.constant 0 : index
    %c1_16 = arith.constant 1 : index
    %c0_17 = arith.constant 0 : index
    %13 = vector.load %arg1[%c0_14, %c0_15, %c1_16, %c0_17] : memref<1x36x9x4xbf16, #tpu.memory_space<vmem>>, vector<1x8x8x4xbf16>
    %14 = vector.shape_cast %13 : vector<1x8x8x4xbf16> to vector<8x8x4xbf16>
    %15 = vector.shape_cast %14 : vector<8x8x4xbf16> to vector<64x4xbf16>
    %c0_18 = arith.constant 0 : index
    %c2 = arith.constant 2 : index
    %c0_19 = arith.constant 0 : index
    %c0_20 = arith.constant 0 : index
    %16 = vector.load %arg2[%c0_18, %c2, %c0_19, %c0_20] : memref<3x3x4x8xbf16, #tpu.memory_space<vmem>>, vector<1x1x4x8xbf16>
    %17 = vector.shape_cast %16 : vector<1x1x4x8xbf16> to vector<4x8xbf16>
    %cst_21 = arith.constant dense<0.000000e+00> : vector<64x8xf32>
    %18 = tpu.matmul %15, %17, %cst_21 {dimension_numbers = #tpu.dot_dimension_numbers<[1], [0], [0], [1], [0, 0, 1, 1], [], []>} : vector<64x4xbf16>, vector<4x8xbf16>, vector<64x8xf32> -> vector<64x8xf32>
    %19 = arith.addf %12, %18 : vector<64x8xf32>
    %c0_22 = arith.constant 0 : index
    %c18 = arith.constant 18 : index
    %c0_23 = arith.constant 0 : index
    %c0_24 = arith.constant 0 : index
    %20 = vector.load %arg1[%c0_22, %c18, %c0_23, %c0_24] : memref<1x36x9x4xbf16, #tpu.memory_space<vmem>>, vector<1x8x8x4xbf16>
    %21 = vector.shape_cast %20 : vector<1x8x8x4xbf16> to vector<8x8x4xbf16>
    %22 = vector.shape_cast %21 : vector<8x8x4xbf16> to vector<64x4xbf16>
    %c1_25 = arith.constant 1 : index
    %c0_26 = arith.constant 0 : index
    %c0_27 = arith.constant 0 : index
    %c0_28 = arith.constant 0 : index
    %23 = vector.load %arg2[%c1_25, %c0_26, %c0_27, %c0_28] : memref<3x3x4x8xbf16, #tpu.memory_space<vmem>>, vector<1x1x4x8xbf16>
    %24 = vector.shape_cast %23 : vector<1x1x4x8xbf16> to vector<4x8xbf16>
    %cst_29 = arith.constant dense<0.000000e+00> : vector<64x8xf32>
    %25 = tpu.matmul %22, %24, %cst_29 {dimension_numbers = #tpu.dot_dimension_numbers<[1], [0], [0], [1], [0, 0, 1, 1], [], []>} : vector<64x4xbf16>, vector<4x8xbf16>, vector<64x8xf32> -> vector<64x8xf32>
    %26 = arith.addf %19, %25 : vector<64x8xf32>
    %c0_30 = arith.constant 0 : index
    %c27 = arith.constant 27 : index
    %c0_31 = arith.constant 0 : index
    %c0_32 = arith.constant 0 : index
    %27 = vector.load %arg1[%c0_30, %c27, %c0_31, %c0_32] : memref<1x36x9x4xbf16, #tpu.memory_space<vmem>>, vector<1x8x8x4xbf16>
    %28 = vector.shape_cast %27 : vector<1x8x8x4xbf16> to vector<8x8x4xbf16>
    %29 = vector.shape_cast %28 : vector<8x8x4xbf16> to vector<64x4xbf16>
    %c1_33 = arith.constant 1 : index
    %c1_34 = arith.constant 1 : index
    %c0_35 = arith.constant 0 : index
    %c0_36 = arith.constant 0 : index
    %30 = vector.load %arg2[%c1_33, %c1_34, %c0_35, %c0_36] : memref<3x3x4x8xbf16, #tpu.memory_space<vmem>>, vector<1x1x4x8xbf16>
    %31 = vector.shape_cast %30 : vector<1x1x4x8xbf16> to vector<4x8xbf16>
    %cst_37 = arith.constant dense<0.000000e+00> : vector<64x8xf32>
    %32 = tpu.matmul %29, %31, %cst_37 {dimension_numbers = #tpu.dot_dimension_numbers<[1], [0], [0], [1], [0, 0, 1, 1], [], []>} : vector<64x4xbf16>, vector<4x8xbf16>, vector<64x8xf32> -> vector<64x8xf32>
    %33 = arith.addf %26, %32 : vector<64x8xf32>
    %c0_38 = arith.constant 0 : index
    %c18_39 = arith.constant 18 : index
    %c1_40 = arith.constant 1 : index
    %c0_41 = arith.constant 0 : index
    %34 = vector.load %arg1[%c0_38, %c18_39, %c1_40, %c0_41] : memref<1x36x9x4xbf16, #tpu.memory_space<vmem>>, vector<1x8x8x4xbf16>
    %35 = vector.shape_cast %34 : vector<1x8x8x4xbf16> to vector<8x8x4xbf16>
    %36 = vector.shape_cast %35 : vector<8x8x4xbf16> to vector<64x4xbf16>
    %c1_42 = arith.constant 1 : index
    %c2_43 = arith.constant 2 : index
    %c0_44 = arith.constant 0 : index
    %c0_45 = arith.constant 0 : index
    %37 = vector.load %arg2[%c1_42, %c2_43, %c0_44, %c0_45] : memref<3x3x4x8xbf16, #tpu.memory_space<vmem>>, vector<1x1x4x8xbf16>
    %38 = vector.shape_cast %37 : vector<1x1x4x8xbf16> to vector<4x8xbf16>
    %cst_46 = arith.constant dense<0.000000e+00> : vector<64x8xf32>
    %39 = tpu.matmul %36, %38, %cst_46 {dimension_numbers = #tpu.dot_dimension_numbers<[1], [0], [0], [1], [0, 0, 1, 1], [], []>} : vector<64x4xbf16>, vector<4x8xbf16>, vector<64x8xf32> -> vector<64x8xf32>
    %40 = arith.addf %33, %39 : vector<64x8xf32>
    %c0_47 = arith.constant 0 : index
    %c1_48 = arith.constant 1 : index
    %c0_49 = arith.constant 0 : index
    %c0_50 = arith.constant 0 : index
    %41 = vector.load %arg1[%c0_47, %c1_48, %c0_49, %c0_50] : memref<1x36x9x4xbf16, #tpu.memory_space<vmem>>, vector<1x8x8x4xbf16>
    %42 = vector.shape_cast %41 : vector<1x8x8x4xbf16> to vector<8x8x4xbf16>
    %43 = vector.shape_cast %42 : vector<8x8x4xbf16> to vector<64x4xbf16>
    %c2_51 = arith.constant 2 : index
    %c0_52 = arith.constant 0 : index
    %c0_53 = arith.constant 0 : index
    %c0_54 = arith.constant 0 : index
    %44 = vector.load %arg2[%c2_51, %c0_52, %c0_53, %c0_54] : memref<3x3x4x8xbf16, #tpu.memory_space<vmem>>, vector<1x1x4x8xbf16>
    %45 = vector.shape_cast %44 : vector<1x1x4x8xbf16> to vector<4x8xbf16>
    %cst_55 = arith.constant dense<0.000000e+00> : vector<64x8xf32>
    %46 = tpu.matmul %43, %45, %cst_55 {dimension_numbers = #tpu.dot_dimension_numbers<[1], [0], [0], [1], [0, 0, 1, 1], [], []>} : vector<64x4xbf16>, vector<4x8xbf16>, vector<64x8xf32> -> vector<64x8xf32>
    %47 = arith.addf %40, %46 : vector<64x8xf32>
    %c0_56 = arith.constant 0 : index
    %c10 = arith.constant 10 : index
    %c0_57 = arith.constant 0 : index
    %c0_58 = arith.constant 0 : index
    %48 = vector.load %arg1[%c0_56, %c10, %c0_57, %c0_58] : memref<1x36x9x4xbf16, #tpu.memory_space<vmem>>, vector<1x8x8x4xbf16>
    %49 = vector.shape_cast %48 : vector<1x8x8x4xbf16> to vector<8x8x4xbf16>
    %50 = vector.shape_cast %49 : vector<8x8x4xbf16> to vector<64x4xbf16>
    %c2_59 = arith.constant 2 : index
    %c1_60 = arith.constant 1 : index
    %c0_61 = arith.constant 0 : index
    %c0_62 = arith.constant 0 : index
    %51 = vector.load %arg2[%c2_59, %c1_60, %c0_61, %c0_62] : memref<3x3x4x8xbf16, #tpu.memory_space<vmem>>, vector<1x1x4x8xbf16>
    %52 = vector.shape_cast %51 : vector<1x1x4x8xbf16> to vector<4x8xbf16>
    %cst_63 = arith.constant dense<0.000000e+00> : vector<64x8xf32>
    %53 = tpu.matmul %50, %52, %cst_63 {dimension_numbers = #tpu.dot_dimension_numbers<[1], [0], [0], [1], [0, 0, 1, 1], [], []>} : vector<64x4xbf16>, vector<4x8xbf16>, vector<64x8xf32> -> vector<64x8xf32>
    %54 = arith.addf %47, %53 : vector<64x8xf32>
    %c0_64 = arith.constant 0 : index
    %c1_65 = arith.constant 1 : index
    %c1_66 = arith.constant 1 : index
    %c0_67 = arith.constant 0 : index
    %55 = vector.load %arg1[%c0_64, %c1_65, %c1_66, %c0_67] : memref<1x36x9x4xbf16, #tpu.memory_space<vmem>>, vector<1x8x8x4xbf16>
    %56 = vector.shape_cast %55 : vector<1x8x8x4xbf16> to vector<8x8x4xbf16>
    %57 = vector.shape_cast %56 : vector<8x8x4xbf16> to vector<64x4xbf16>
    %c2_68 = arith.constant 2 : index
    %c2_69 = arith.constant 2 : index
    %c0_70 = arith.constant 0 : index
    %c0_71 = arith.constant 0 : index
    %58 = vector.load %arg2[%c2_68, %c2_69, %c0_70, %c0_71] : memref<3x3x4x8xbf16, #tpu.memory_space<vmem>>, vector<1x1x4x8xbf16>
    %59 = vector.shape_cast %58 : vector<1x1x4x8xbf16> to vector<4x8xbf16>
    %cst_72 = arith.constant dense<0.000000e+00> : vector<64x8xf32>
    %60 = tpu.matmul %57, %59, %cst_72 {dimension_numbers = #tpu.dot_dimension_numbers<[1], [0], [0], [1], [0, 0, 1, 1], [], []>} : vector<64x4xbf16>, vector<4x8xbf16>, vector<64x8xf32> -> vector<64x8xf32>
    %61 = arith.addf %54, %60 : vector<64x8xf32>
    %c0_73 = arith.constant 0 : index
    %c0_74 = arith.constant 0 : index
    %62 = vector.load %arg3[%c0_73, %c0_74] : memref<1x8xf32, #tpu.memory_space<vmem>>, vector<1x8xf32>
    %63 = vector.broadcast %62 : vector<1x8xf32> to vector<64x8xf32>
    %64 = arith.addf %61, %63 : vector<64x8xf32>
    %cst_75 = arith.constant 0.000000e+00 : f32
    %65 = vector.broadcast %cst_75 : f32 to vector<64x8xf32>
    %66 = arith.cmpf oge, %64, %65 : vector<64x8xf32>
    %cst_76 = arith.constant 0.00999999977 : f32
    %67 = vector.broadcast %cst_76 : f32 to vector<64x8xf32>
    %68 = arith.mulf %67, %64 : vector<64x8xf32>
    %69 = arith.select %66, %64, %68 : vector<64x8xi1>, vector<64x8xf32>
    %cst_77 = arith.constant 0.000000e+00 : bf16
    %70 = vector.broadcast %cst_77 : bf16 to vector<10x10x8xbf16>
    %c0_78 = arith.constant 0 : index
    %c0_79 = arith.constant 0 : index
    %c0_80 = arith.constant 0 : index
    %71 = vector.load %arg8[%c0_78, %c0_79, %c0_80] : memref<10x10x8xbf16, #tpu.memory_space<vmem>>, vector<10x10x8xbf16>
    tpu.vector_store %arg8[%c0_78, %c0_79, %c0_80], %70 {strides = array<i32>} : memref<10x10x8xbf16, #tpu.memory_space<vmem>>, vector<10x10x8xbf16>,
    %72 = vector.shape_cast %69 : vector<64x8xf32> to vector<8x8x8xf32>
    %73 = arith.truncf %72 : vector<8x8x8xf32> to vector<8x8x8xbf16>
    %c1_81 = arith.constant 1 : index
    %c1_82 = arith.constant 1 : index
    %c0_83 = arith.constant 0 : index
    %74 = vector.load %arg8[%c1_81, %c1_82, %c0_83] : memref<10x10x8xbf16, #tpu.memory_space<vmem>>, vector<8x8x8xbf16>
    tpu.vector_store %arg8[%c1_81, %c1_82, %c0_83], %73 {strides = array<i32>} : memref<10x10x8xbf16, #tpu.memory_space<vmem>>, vector<8x8x8xbf16>,
    %c0_84 = arith.constant 0 : index
    %c0_85 = arith.constant 0 : index
    %c0_86 = arith.constant 0 : index
    %75 = vector.load %arg8[%c0_84, %c0_85, %c0_86] : memref<10x10x8xbf16, #tpu.memory_space<vmem>>, vector<8x8x8xbf16>
    %76 = vector.shape_cast %75 : vector<8x8x8xbf16> to vector<64x8xbf16>
    %c0_87 = arith.constant 0 : index
    %c0_88 = arith.constant 0 : index
    %c0_89 = arith.constant 0 : index
    %c0_90 = arith.constant 0 : index
    %77 = vector.load %arg4[%c0_87, %c0_88, %c0_89, %c0_90] : memref<3x3x8x8xbf16, #tpu.memory_space<vmem>>, vector<1x1x8x8xbf16>
    %78 = vector.shape_cast %77 : vector<1x1x8x8xbf16> to vector<8x8xbf16>
    %cst_91 = arith.constant dense<0.000000e+00> : vector<64x8xf32>
    %79 = tpu.matmul %76, %78, %cst_91 {dimension_numbers = #tpu.dot_dimension_numbers<[1], [0], [0], [1], [0, 0, 1, 1], [], []>} : vector<64x8xbf16>, vector<8x8xbf16>, vector<64x8xf32> -> vector<64x8xf32>
    %c0_92 = arith.constant 0 : index
    %c1_93 = arith.constant 1 : index
    %c0_94 = arith.constant 0 : index
    %80 = vector.load %arg8[%c0_92, %c1_93, %c0_94] : memref<10x10x8xbf16, #tpu.memory_space<vmem>>, vector<8x8x8xbf16>
    %81 = vector.shape_cast %80 : vector<8x8x8xbf16> to vector<64x8xbf16>
    %c0_95 = arith.constant 0 : index
    %c1_96 = arith.constant 1 : index
    %c0_97 = arith.constant 0 : index
    %c0_98 = arith.constant 0 : index
    %82 = vector.load %arg4[%c0_95, %c1_96, %c0_97, %c0_98] : memref<3x3x8x8xbf16, #tpu.memory_space<vmem>>, vector<1x1x8x8xbf16>
    %83 = vector.shape_cast %82 : vector<1x1x8x8xbf16> to vector<8x8xbf16>
    %cst_99 = arith.constant dense<0.000000e+00> : vector<64x8xf32>
    %84 = tpu.matmul %81, %83, %cst_99 {dimension_numbers = #tpu.dot_dimension_numbers<[1], [0], [0], [1], [0, 0, 1, 1], [], []>} : vector<64x8xbf16>, vector<8x8xbf16>, vector<64x8xf32> -> vector<64x8xf32>
    %85 = arith.addf %79, %84 : vector<64x8xf32>
    %c0_100 = arith.constant 0 : index
    %c2_101 = arith.constant 2 : index
    %c0_102 = arith.constant 0 : index
    %86 = vector.load %arg8[%c0_100, %c2_101, %c0_102] : memref<10x10x8xbf16, #tpu.memory_space<vmem>>, vector<8x8x8xbf16>
    %87 = vector.shape_cast %86 : vector<8x8x8xbf16> to vector<64x8xbf16>
    %c0_103 = arith.constant 0 : index
    %c2_104 = arith.constant 2 : index
    %c0_105 = arith.constant 0 : index
    %c0_106 = arith.constant 0 : index
    %88 = vector.load %arg4[%c0_103, %c2_104, %c0_105, %c0_106] : memref<3x3x8x8xbf16, #tpu.memory_space<vmem>>, vector<1x1x8x8xbf16>
    %89 = vector.shape_cast %88 : vector<1x1x8x8xbf16> to vector<8x8xbf16>
    %cst_107 = arith.constant dense<0.000000e+00> : vector<64x8xf32>
    %90 = tpu.matmul %87, %89, %cst_107 {dimension_numbers = #tpu.dot_dimension_numbers<[1], [0], [0], [1], [0, 0, 1, 1], [], []>} : vector<64x8xbf16>, vector<8x8xbf16>, vector<64x8xf32> -> vector<64x8xf32>
    %91 = arith.addf %85, %90 : vector<64x8xf32>
    %c1_108 = arith.constant 1 : index
    %c0_109 = arith.constant 0 : index
    %c0_110 = arith.constant 0 : index
    %92 = vector.load %arg8[%c1_108, %c0_109, %c0_110] : memref<10x10x8xbf16, #tpu.memory_space<vmem>>, vector<8x8x8xbf16>
    %93 = vector.shape_cast %92 : vector<8x8x8xbf16> to vector<64x8xbf16>
    %c1_111 = arith.constant 1 : index
    %c0_112 = arith.constant 0 : index
    %c0_113 = arith.constant 0 : index
    %c0_114 = arith.constant 0 : index
    %94 = vector.load %arg4[%c1_111, %c0_112, %c0_113, %c0_114] : memref<3x3x8x8xbf16, #tpu.memory_space<vmem>>, vector<1x1x8x8xbf16>
    %95 = vector.shape_cast %94 : vector<1x1x8x8xbf16> to vector<8x8xbf16>
    %cst_115 = arith.constant dense<0.000000e+00> : vector<64x8xf32>
    %96 = tpu.matmul %93, %95, %cst_115 {dimension_numbers = #tpu.dot_dimension_numbers<[1], [0], [0], [1], [0, 0, 1, 1], [], []>} : vector<64x8xbf16>, vector<8x8xbf16>, vector<64x8xf32> -> vector<64x8xf32>
    %97 = arith.addf %91, %96 : vector<64x8xf32>
    %c1_116 = arith.constant 1 : index
    %c1_117 = arith.constant 1 : index
    %c0_118 = arith.constant 0 : index
    %98 = vector.load %arg8[%c1_116, %c1_117, %c0_118] : memref<10x10x8xbf16, #tpu.memory_space<vmem>>, vector<8x8x8xbf16>
    %99 = vector.shape_cast %98 : vector<8x8x8xbf16> to vector<64x8xbf16>
    %c1_119 = arith.constant 1 : index
    %c1_120 = arith.constant 1 : index
    %c0_121 = arith.constant 0 : index
    %c0_122 = arith.constant 0 : index
    %100 = vector.load %arg4[%c1_119, %c1_120, %c0_121, %c0_122] : memref<3x3x8x8xbf16, #tpu.memory_space<vmem>>, vector<1x1x8x8xbf16>
    %101 = vector.shape_cast %100 : vector<1x1x8x8xbf16> to vector<8x8xbf16>
    %cst_123 = arith.constant dense<0.000000e+00> : vector<64x8xf32>
    %102 = tpu.matmul %99, %101, %cst_123 {dimension_numbers = #tpu.dot_dimension_numbers<[1], [0], [0], [1], [0, 0, 1, 1], [], []>} : vector<64x8xbf16>, vector<8x8xbf16>, vector<64x8xf32> -> vector<64x8xf32>
    %103 = arith.addf %97, %102 : vector<64x8xf32>
    %c1_124 = arith.constant 1 : index
    %c2_125 = arith.constant 2 : index
    %c0_126 = arith.constant 0 : index
    %104 = vector.load %arg8[%c1_124, %c2_125, %c0_126] : memref<10x10x8xbf16, #tpu.memory_space<vmem>>, vector<8x8x8xbf16>
    %105 = vector.shape_cast %104 : vector<8x8x8xbf16> to vector<64x8xbf16>
    %c1_127 = arith.constant 1 : index
    %c2_128 = arith.constant 2 : index
    %c0_129 = arith.constant 0 : index
    %c0_130 = arith.constant 0 : index
    %106 = vector.load %arg4[%c1_127, %c2_128, %c0_129, %c0_130] : memref<3x3x8x8xbf16, #tpu.memory_space<vmem>>, vector<1x1x8x8xbf16>
    %107 = vector.shape_cast %106 : vector<1x1x8x8xbf16> to vector<8x8xbf16>
    %cst_131 = arith.constant dense<0.000000e+00> : vector<64x8xf32>
    %108 = tpu.matmul %105, %107, %cst_131 {dimension_numbers = #tpu.dot_dimension_numbers<[1], [0], [0], [1], [0, 0, 1, 1], [], []>} : vector<64x8xbf16>, vector<8x8xbf16>, vector<64x8xf32> -> vector<64x8xf32>
    %109 = arith.addf %103, %108 : vector<64x8xf32>
    %c2_132 = arith.constant 2 : index
    %c0_133 = arith.constant 0 : index
    %c0_134 = arith.constant 0 : index
    %110 = vector.load %arg8[%c2_132, %c0_133, %c0_134] : memref<10x10x8xbf16, #tpu.memory_space<vmem>>, vector<8x8x8xbf16>
    %111 = vector.shape_cast %110 : vector<8x8x8xbf16> to vector<64x8xbf16>
    %c2_135 = arith.constant 2 : index
    %c0_136 = arith.constant 0 : index
    %c0_137 = arith.constant 0 : index
    %c0_138 = arith.constant 0 : index
    %112 = vector.load %arg4[%c2_135, %c0_136, %c0_137, %c0_138] : memref<3x3x8x8xbf16, #tpu.memory_space<vmem>>, vector<1x1x8x8xbf16>
    %113 = vector.shape_cast %112 : vector<1x1x8x8xbf16> to vector<8x8xbf16>
    %cst_139 = arith.constant dense<0.000000e+00> : vector<64x8xf32>
    %114 = tpu.matmul %111, %113, %cst_139 {dimension_numbers = #tpu.dot_dimension_numbers<[1], [0], [0], [1], [0, 0, 1, 1], [], []>} : vector<64x8xbf16>, vector<8x8xbf16>, vector<64x8xf32> -> vector<64x8xf32>
    %115 = arith.addf %109, %114 : vector<64x8xf32>
    %c2_140 = arith.constant 2 : index
    %c1_141 = arith.constant 1 : index
    %c0_142 = arith.constant 0 : index
    %116 = vector.load %arg8[%c2_140, %c1_141, %c0_142] : memref<10x10x8xbf16, #tpu.memory_space<vmem>>, vector<8x8x8xbf16>
    %117 = vector.shape_cast %116 : vector<8x8x8xbf16> to vector<64x8xbf16>
    %c2_143 = arith.constant 2 : index
    %c1_144 = arith.constant 1 : index
    %c0_145 = arith.constant 0 : index
    %c0_146 = arith.constant 0 : index
    %118 = vector.load %arg4[%c2_143, %c1_144, %c0_145, %c0_146] : memref<3x3x8x8xbf16, #tpu.memory_space<vmem>>, vector<1x1x8x8xbf16>
    %119 = vector.shape_cast %118 : vector<1x1x8x8xbf16> to vector<8x8xbf16>
    %cst_147 = arith.constant dense<0.000000e+00> : vector<64x8xf32>
    %120 = tpu.matmul %117, %119, %cst_147 {dimension_numbers = #tpu.dot_dimension_numbers<[1], [0], [0], [1], [0, 0, 1, 1], [], []>} : vector<64x8xbf16>, vector<8x8xbf16>, vector<64x8xf32> -> vector<64x8xf32>
    %121 = arith.addf %115, %120 : vector<64x8xf32>
    %c2_148 = arith.constant 2 : index
    %c2_149 = arith.constant 2 : index
    %c0_150 = arith.constant 0 : index
    %122 = vector.load %arg8[%c2_148, %c2_149, %c0_150] : memref<10x10x8xbf16, #tpu.memory_space<vmem>>, vector<8x8x8xbf16>
    %123 = vector.shape_cast %122 : vector<8x8x8xbf16> to vector<64x8xbf16>
    %c2_151 = arith.constant 2 : index
    %c2_152 = arith.constant 2 : index
    %c0_153 = arith.constant 0 : index
    %c0_154 = arith.constant 0 : index
    %124 = vector.load %arg4[%c2_151, %c2_152, %c0_153, %c0_154] : memref<3x3x8x8xbf16, #tpu.memory_space<vmem>>, vector<1x1x8x8xbf16>
    %125 = vector.shape_cast %124 : vector<1x1x8x8xbf16> to vector<8x8xbf16>
    %cst_155 = arith.constant dense<0.000000e+00> : vector<64x8xf32>
    %126 = tpu.matmul %123, %125, %cst_155 {dimension_numbers = #tpu.dot_dimension_numbers<[1], [0], [0], [1], [0, 0, 1, 1], [], []>} : vector<64x8xbf16>, vector<8x8xbf16>, vector<64x8xf32> -> vector<64x8xf32>
    %127 = arith.addf %121, %126 : vector<64x8xf32>
    %c0_156 = arith.constant 0 : index
    %c0_157 = arith.constant 0 : index
    %128 = vector.load %arg5[%c0_156, %c0_157] : memref<1x8xf32, #tpu.memory_space<vmem>>, vector<1x8xf32>
    %129 = vector.broadcast %128 : vector<1x8xf32> to vector<64x8xf32>
    %130 = arith.addf %127, %129 : vector<64x8xf32>
    %c0_158 = arith.constant 0 : index
    %c27_159 = arith.constant 27 : index
    %c0_160 = arith.constant 0 : index
    %c0_161 = arith.constant 0 : index
    %131 = vector.load %arg1[%c0_158, %c27_159, %c0_160, %c0_161] : memref<1x36x9x4xbf16, #tpu.memory_space<vmem>>, vector<1x8x8x4xbf16>
    %132 = vector.shape_cast %131 : vector<1x8x8x4xbf16> to vector<8x8x4xbf16>
    %133 = vector.shape_cast %132 : vector<8x8x4xbf16> to vector<64x4xbf16>
    %c0_162 = arith.constant 0 : index
    %c0_163 = arith.constant 0 : index
    %134 = vector.load %arg6[%c0_162, %c0_163] : memref<4x8xbf16, #tpu.memory_space<vmem>>, vector<4x8xbf16>
    %cst_164 = arith.constant dense<0.000000e+00> : vector<64x8xf32>
    %135 = tpu.matmul %133, %134, %cst_164 {dimension_numbers = #tpu.dot_dimension_numbers<[1], [0], [0], [1], [0, 0, 1, 1], [], []>} : vector<64x4xbf16>, vector<4x8xbf16>, vector<64x8xf32> -> vector<64x8xf32>
    %136 = arith.addf %130, %135 : vector<64x8xf32>
    %cst_165 = arith.constant 0.000000e+00 : f32
    %137 = vector.broadcast %cst_165 : f32 to vector<64x8xf32>
    %138 = arith.cmpf oge, %136, %137 : vector<64x8xf32>
    %cst_166 = arith.constant 0.00999999977 : f32
    %139 = vector.broadcast %cst_166 : f32 to vector<64x8xf32>
    %140 = arith.mulf %139, %136 : vector<64x8xf32>
    %141 = arith.select %138, %136, %140 : vector<64x8xi1>, vector<64x8xf32>
    %142 = vector.shape_cast %141 : vector<64x8xf32> to vector<8x8x8xf32>
    %c0_167 = arith.constant 0 : index
    %c0_168 = arith.constant 0 : index
    %c0_169 = arith.constant 0 : index
    %c0_170 = arith.constant 0 : index
    %143 = vector.load %arg7[%c0_167, %c0_168, %c0_169, %c0_170] : memref<1x8x8x8xf32, #tpu.memory_space<vmem>>, vector<1x8x8x8xf32>
    %144 = vector.shape_cast %143 : vector<1x8x8x8xf32> to vector<8x8x8xf32>
    %145 = vector.shape_cast %142 : vector<8x8x8xf32> to vector<1x8x8x8xf32>
    tpu.vector_store %arg7[%c0_167, %c0_168, %c0_169, %c0_170], %145 {strides = array<i32>} : memref<1x8x8x8xf32, #tpu.memory_space<vmem>>, vector<1x8x8x8xf32>,
    return
  }
  func.func @transform_0(%arg0: i32) -> (i32, i32, i32, i32) {
    %c0_i32 = arith.constant 0 : i32
    %c0_i32_0 = arith.constant 0 : i32
    %c0_i32_1 = arith.constant 0 : i32
    %c0_i32_2 = arith.constant 0 : i32
    return %arg0, %c0_i32, %c0_i32_0, %c0_i32_1 : i32, i32, i32, i32
  }
  func.func @transform_1(%arg0: i32) -> (i32, i32, i32, i32) {
    %c0_i32 = arith.constant 0 : i32
    %c0_i32_0 = arith.constant 0 : i32
    %c0_i32_1 = arith.constant 0 : i32
    %c0_i32_2 = arith.constant 0 : i32
    %c0_i32_3 = arith.constant 0 : i32
    return %c0_i32, %c0_i32_0, %c0_i32_1, %c0_i32_2 : i32, i32, i32, i32
  }
  func.func @transform_2(%arg0: i32) -> (i32, i32) {
    %c0_i32 = arith.constant 0 : i32
    %c0_i32_0 = arith.constant 0 : i32
    %c0_i32_1 = arith.constant 0 : i32
    return %c0_i32, %c0_i32_0 : i32, i32
  }
  func.func @transform_3(%arg0: i32) -> (i32, i32, i32, i32) {
    %c0_i32 = arith.constant 0 : i32
    %c0_i32_0 = arith.constant 0 : i32
    %c0_i32_1 = arith.constant 0 : i32
    %c0_i32_2 = arith.constant 0 : i32
    %c0_i32_3 = arith.constant 0 : i32
    return %c0_i32, %c0_i32_0, %c0_i32_1, %c0_i32_2 : i32, i32, i32, i32
  }
  func.func @transform_4(%arg0: i32) -> (i32, i32) {
    %c0_i32 = arith.constant 0 : i32
    %c0_i32_0 = arith.constant 0 : i32
    %c0_i32_1 = arith.constant 0 : i32
    return %c0_i32, %c0_i32_0 : i32, i32
  }
  func.func @transform_5(%arg0: i32) -> (i32, i32) {
    %c0_i32 = arith.constant 0 : i32
    %c0_i32_0 = arith.constant 0 : i32
    %c0_i32_1 = arith.constant 0 : i32
    return %c0_i32, %c0_i32_0 : i32, i32
  }
  func.func @transform_6(%arg0: i32) -> (i32, i32, i32, i32) {
    %c0_i32 = arith.constant 0 : i32
    %c0_i32_0 = arith.constant 0 : i32
    %c0_i32_1 = arith.constant 0 : i32
    %c0_i32_2 = arith.constant 0 : i32
    return %arg0, %c0_i32, %c0_i32_0, %c0_i32_1 : i32, i32, i32, i32
  }
}

</mosaic_0001>

<bundles_post_ra>
// kernel: residual_block_forward.1
= control target key start
LH: loop header
LB: loop body
LE: loop exit
PB: predicated region body
PF: predicated region fallthrough
CT: control target
= control target key end

     0   :  { %s4436_s21 = smov 0   ;;  %s5123_s0 = inlined_call_operand.vmem [shape: bf16[2,36,9,4], index: 0, kind: input, shape index: {}]   ;;  %s5124_s1 = inlined_call_operand.vmem [shape: bf16[3,3,4,8], index: 1, kind: input, shape index: {}]   ;;  %s5125_s2 = inlined_call_operand.vmem [shape: f32[1,8], index: 2, kind: input, shape index: {}]   ;;  %s5126_s3 = inlined_call_operand.vmem [shape: bf16[3,3,8,8], index: 3, kind: input, shape index: {}]   ;;  %s5127_s4 = inlined_call_operand.vmem [shape: f32[1,8], index: 4, kind: input, shape index: {}]   ;;  %s5128_s5 = inlined_call_operand.vmem [shape: bf16[4,8], index: 5, kind: input, shape index: {}]   ;;  %s5129_s6 = inlined_call_operand.vmem [shape: f32[2,8,8,8], index: 6, kind: output, shape index: {}]  }
   0x1 LB: > { %s3590_s22 = sadd.s32 4294967295, %s4398_s21   ;;  %p3594_p0 = scmp.ge.s32.totalorder %s4398_s21, 1  ;;  %s4398_s21 = sphi %s4436_s21, %s16_s21  }
   0x2   : > { %p212_p1 = scmp.lt.s32.totalorder %s4398_s21, 3 }
   0x4   : > { %p213_p2 = pnand %p3594_p0, %p212_p1 }
   0x5   : > { %v3606_v0 = vld [vmem:[%s5124_s1 + $0x2] sm:$0x3] (!%p213_p2)  ;;  %vm306_vm0 = vcmask (!%p213_p2), 1041408   ;;  %p242_p3 = scmp.lt.s32.totalorder (!%p213_p2), %s3590_s22, 1  ;;  %v261_v2 = vld [vmem:[%s5124_s1] sm:$0x3] (!%p213_p2) }
   0x6   : > { %216 = sbr.rel (%p213_p2) target bundleno = 776 (0x308), region = 44  ;;  %4322 = vmatprep.subr.msk.bf16.mxu0 (!%p213_p2), %vm306_vm0, %v3606_v0  ;;  %v308_v1 = vsel (!%p213_p2), %vm306_vm0, %v3606_v0, 0  ;;  %vm293_vm1 = vcmask (!%p213_p2), 31744   ;;  %v408_v3 = vsel (!%p213_p2), %vm306_vm0, %v261_v2, 0  ;;  %v3623_v5 = vld [vmem:[%s5124_s1 + $0x4] sm:$0x3] (!%p213_p2) }
   0x7   : > { %3987 = vmatpush3.bf16.msra.mxu0 (!%p213_p2), %v308_v1  ;;  %vm491_vm2 = vsmask.f32 (!%p213_p2), 3328  ;;  %vm492_vm3 = vsmask.f32 (!%p213_p2), 7440  ;;  %v633_v50 = vsel (!%p213_p2), %vm306_vm0, %v3623_v5, 0  ;;  %vm1683_vm5 = vcmask (!%p213_p2), 60416  }
   0x8   : > { %4323 = vmatprep.subr.msk.bf16.mxu0 (!%p213_p2), %vm306_vm0, %v261_v2  ;;  %vm4489_vm4 = vmor (!%p213_p2), %vm491_vm2, %vm492_vm3  ;;  %v3640_v55 = vld [vmem:[%s5124_s1 + $0x6] sm:$0x3] (!%p213_p2)  ;;  %vm1685_vm6 = vcmask (!%p213_p2), 57344   ;;  %vm2028_vm7 = vcmask (!%p213_p2), 1043456   ;;  %vm1819_vm8 = vsmask.f32 (!%p213_p2), 7938 }
   0x9   : > { %vm1825_vm9 = vsmask.f32 (!%p213_p2), 256  ;;  %vm4715_vm14 = vmand (!%p213_p2), %vm1683_vm5, %vm1819_vm8  ;;  %vm2015_vm8 = vcmask (!%p213_p2), 64512  }
   0xa   : > { %vm4722_vm15 = vmand (!%p213_p2), %vm1685_vm6, %vm1825_vm9  ;;  %vm2221_vm9 = vcmask (!%p213_p2), 1042432  }
   0xd   : > { %s5139_s22 = smov (!%p242_p3, %s3590_s22), 1 }
   0xe   : > { %s4342_s27 = smul.u32 288, %s5139_s22  ;;  %s3882_s26 = sshll.u32 %s5139_s22, 6 }
   0xf   : > { %s5102_s28 = scalar_lea.vmem %s5129_s6, %s3882_s26 }
  0x10   : > { %s4459_s30 = scalar_lea.vmem %s5123_s0, %s4342_s27 }
  0x11   : > { %v4352_v4 = vld [vmem:[%s4459_s30 + $0x48] ss:$8 sps:$4 sm:$0xff]   ;;  %v4353_v6 = vld [vmem:[%s4459_s30 + $0x58] ss:$8 sps:$4 sm:$0xff]   ;;  %v476_v11 = vld [vmem:[%s4459_s30 + $0x4] sm:$0x1] }
  0x12   : > { %3988 = vmatprep.mubr.msk.bf16.mxu0 %vm293_vm1, %v4352_v4  ;;  %v4354_v7 = vld [vmem:[%s4459_s30 + $0x68] ss:$8 sps:$4 sm:$0xff]   ;;  %v4355_v8 = vld [vmem:[%s4459_s30 + $0x78] ss:$8 sps:$4 sm:$0xff]   ;;  %v478_v13 = vld [vmem:[%s4459_s30 + $0xc] sm:$0x1] }
  0x13   : > { %3989 = vmatmul.mubr.msk.bf16.vlgmr.msra.gmra.mrb[0].mxu0 %vm293_vm1, %v4353_v6  ;;  %v4356_v9 = vld [vmem:[%s4459_s30] ss:$8 sps:$4 sm:$0xff]   ;;  %v504_v17 = vshll.u32 %v476_v11, 16  ;;  %v479_v19 = vld [vmem:[%s4459_s30 + $0x10] sm:$0xf]  ;;  %v518_v23 = vshll.u32 %v478_v13, 16 }
  0x14   : > { %3997 = vmatpush3.bf16.msra.mxu0 %v408_v3  ;;  %3992 = vmatprep.mubr.msk.bf16.mxu0 %vm293_vm1, %v4354_v7  ;;  %v475_v10 = vld [vmem:[%s4459_s30] sm:$0xf]  ;;  %v477_v12 = vld [vmem:[%s4459_s30 + $0x8] sm:$0xf]  ;;  %v481_v24 = vld [vmem:[%s4459_s30 + $0x18] sm:$0xf] }
  0x15   : > { %4324 = vmatprep.subr.msk.bf16.mxu0 %vm306_vm0, %v3623_v5  ;;  %v495_v14 = vshrl.u32 %v475_v10, 16  ;;  %v498_v15 = vshll.u32 %v475_v10, 16  ;;  %v509_v16 = vshrl.u32 %v477_v12, 16  ;;  %v512_v18 = vshll.u32 %v477_v12, 16  ;;  %v4357_v28 = vld [vmem:[%s4459_s30 + $0x10] ss:$8 sps:$4 sm:$0xff]  }
  0x16   : > { %v523_v26 = vshrl.u32 %v479_v19, 16  ;;  %v526_v27 = vshll.u32 %v479_v19, 16  ;;  %v480_v30 = vld [vmem:[%s4459_s30 + $0x14] sm:$0x1]  ;;  %v537_v31 = vshrl.u32 %v481_v24, 16  ;;  %v540_v32 = vshll.u32 %v481_v24, 16 }
  0x17   : > { %v497_v20 = vrot.slane %v495_v14, 4  ;;  %v500_v21 = vrot.slane %v498_v15, 5  ;;  %v511_v22 = vrot.slane %v509_v16, 4  ;;  %v514_v25 = vrot.slane %v512_v18, 5  ;;  %v483_v33 = vld [vmem:[%s4459_s30 + $0x20] sm:$0xf] }
  0x18   : > { %v4358_v34 = vld [vmem:[%s4459_s30 + $0x20] ss:$8 sps:$4 sm:$0xff]   ;;  %v506_v35 = vrot.slane %v504_v17, 5  ;;  %v482_v37 = vld [vmem:[%s4459_s30 + $0x1c] sm:$0x1]  ;;  %v525_v38 = vrot.slane %v523_v26, 4 }
  0x19   : > { %v501_v29 = vor.u32 %v500_v21, %v497_v20  ;;  %v515_v36 = vor.u32 %v514_v25, %v511_v22  ;;  %v528_v39 = vrot.slane %v526_v27, 5  ;;  %v520_v42 = vrot.slane %v518_v23, 5  ;;  %v485_v45 = vld [vmem:[%s4459_s30 + $0x28] sm:$0xf]  ;;  %v484_v48 = vld [vmem:[%s4459_s30 + $0x24] sm:$0x1] }
  0x1a   : > { %v539_v43 = vrot.slane %v537_v31, 4  ;;  %v542_v44 = vrot.slane %v540_v32, 5  ;;  %v532_v47 = vshll.u32 %v480_v30, 16  ;;  %v551_v49 = vshrl.u32 %v483_v33, 16  ;;  %v486_v52 = vld [vmem:[%s4459_s30 + $0x2c] sm:$0x1] }
  0x1b   : > { %3993 = vmatmul.mubr.msk.bf16.gmra.mrb[4].mxu0 %vm293_vm1, %v4355_v8  ;;  %v502_v41 = vrot.slane %v501_v29, 4  ;;  %v516_v46 = vrot.slane %v515_v36, 4  ;;  %v546_v51 = vshll.u32 %v482_v37, 16  ;;  %v554_v53 = vshll.u32 %v483_v33, 16  ;;  %v487_v59 = vld [vmem:[%s4459_s30 + $0x30] sm:$0xf] }
  0x1c   : > { %3998 = vmatprep.mubr.msk.bf16.mxu0 %vm293_vm1, %v4356_v9  ;;  %v529_v56 = vor.u32 %v528_v39, %v525_v38  ;;  %v553_v57 = vrot.slane %v551_v49, 4  ;;  %v565_v58 = vshrl.u32 %v485_v45, 16  ;;  %v543_v61 = vor.u32 %v542_v44, %v539_v43  ;;  %v489_v0 = vld [vmem:[%s4459_s30 + $0x38] sm:$0xf]  ;;  %v488_v13 = vld [vmem:[%s4459_s30 + $0x34] sm:$0x1] }
  0x1d   : > { %v507_v54 = vsel %vm4489_vm4, %v502_v41, %v506_v35  ;;  %v521_v60 = vsel %vm4489_vm4, %v516_v46, %v520_v42  ;;  %v556_v62 = vrot.slane %v554_v53, 5  ;;  %v560_v63 = vshll.u32 %v484_v48, 16  ;;  %v4359_v5 = vld [vmem:[%s4459_s30 + $0x30] ss:$8 sps:$4 sm:$0xff]   ;;  %v490_v19 = vld [vmem:[%s4459_s30 + $0x3c] sm:$0x1] }
  0x1e   : > { %v534_v1 = vrot.slane %v532_v47, 5  ;;  %v567_v2 = vrot.slane %v565_v58, 4  ;;  %v568_v3 = vshll.u32 %v485_v45, 16  ;;  %v574_v4 = vshll.u32 %v486_v52, 16  ;;  %v3657_v43 = vld [vmem:[%s5124_s1 + $0x8] sm:$0x3] }
  0x1f   : > { %v548_v6 = vrot.slane %v546_v51, 5  ;;  %v557_v7 = vor.u32 %v556_v62, %v553_v57  ;;  %v579_v8 = vshrl.u32 %v487_v59, 16  ;;  %v582_v9 = vshll.u32 %v487_v59, 16  ;;  %v4360_v47 = vld [vmem:[%s4459_s30 + $0x90] ss:$8 sps:$4 sm:$0xff]  }
  0x20   : > { %v3624_v10 = vcombine.low %v507_v54, %v521_v60  ;;  %v530_v11 = vrot.slane %v529_v56, 4  ;;  %v570_v12 = vrot.slane %v568_v3, 5  ;;  %v544_v14 = vrot.slane %v543_v61, 4  ;;  %v4361_v48 = vld [vmem:[%s4459_s30 + $0xa0] ss:$8 sps:$4 sm:$0xff]  }
  0x21   : > { %v562_v15 = vrot.slane %v560_v63, 5  ;;  %v576_v16 = vrot.slane %v574_v4, 5  ;;  %v593_v17 = vshrl.u32 %v489_v0, 16  ;;  %v581_v20 = vrot.slane %v579_v8, 4  ;;  %v3666_v49 = vld [vmem:[%s4459_s30 + $0x90] sm:$0xf] }
  0x22   : > { %v571_v18 = vor.u32 %v570_v12, %v567_v2  ;;  %v584_v21 = vrot.slane %v582_v9, 5  ;;  %v596_v22 = vshll.u32 %v489_v0, 16  ;;  %v558_v23 = vrot.slane %v557_v7, 4  ;;  %v4362_v51 = vld [vmem:[%s4459_s30 + $0xb0] ss:$8 sps:$4 sm:$0xff]  }
  0x23   : > { %3999 = vmatmul.mubr.msk.bf16.vlgmr.msra.gmra.mrb[0].mxu0 %vm293_vm1, %v4357_v28  ;;  %v595_v24 = vrot.slane %v593_v17, 4  ;;  %v535_v27 = vsel %vm4489_vm4, %v530_v11, %v534_v1  ;;  %v588_v28 = vshll.u32 %v488_v13, 16  ;;  %v549_v29 = vsel %vm4489_vm4, %v544_v14, %v548_v6  ;;  %v3668_v52 = vld [vmem:[%s4459_s30 + $0x98] sm:$0xf]  ;;  %v3682_v53 = vld [vmem:[%s5124_s1 + $0xa] sm:$0x3] }
  0x24   : > { %4007 = vmatpush3.bf16.msra.mxu0 %v633_v50  ;;  %4002 = vmatprep.mubr.msk.bf16.mxu0 %vm293_vm1, %v4358_v34  ;;  %v572_v25 = vrot.slane %v571_v18, 4  ;;  %v598_v26 = vrot.slane %v596_v22, 5  ;;  %v585_v30 = vor.u32 %v584_v21, %v581_v20  ;;  %v602_v32 = vshll.u32 %v490_v19, 16  ;;  %v3667_v54 = vld [vmem:[%s4459_s30 + $0x94] sm:$0x1] }
  0x25   : > { %4325 = vmatprep.subr.msk.bf16.mxu0 %vm306_vm0, %v3640_v55  ;;  %v563_v33 = vsel %vm4489_vm4, %v558_v23, %v562_v15  ;;  %v3625_v35 = vcombine.low %v535_v27, %v549_v29  ;;  %v590_v36 = vrot.slane %v588_v28, 5  ;;  %v752_v42 = vsel %vm306_vm0, %v3640_v55, 0  ;;  %v3669_v55 = vld [vmem:[%s4459_s30 + $0x9c] sm:$0x1]  ;;  %v4363_v60 = vld [vmem:[%s4459_s30 + $0xc0] ss:$8 sps:$4 sm:$0xff]  }
  0x26   : > { %v599_v31 = vor.u32 %v598_v26, %v595_v24  ;;  %v577_v34 = vsel %vm4489_vm4, %v572_v25, %v576_v16  ;;  %v586_v38 = vrot.slane %v585_v30, 4  ;;  %v604_v41 = vrot.slane %v602_v32, 5  ;;  %v3670_v63 = vld [vmem:[%s4459_s30 + $0xa0] sm:$0xf]  ;;  %v3674_v8 = vld [vmem:[%s4459_s30 + $0xb0] sm:$0xf] }
  0x27   : > { %v3626_v37 = vcombine.low %v563_v33, %v577_v34  ;;  %v871_v50 = vsel %vm306_vm0, %v3657_v43, 0  ;;  %v963_v56 = vshrl.u32 %v3666_v49, 16  ;;  %v966_v57 = vshll.u32 %v3666_v49, 16  ;;  %v4364_v0 = vld [vmem:[%s4459_s30 + $0xd8] ss:$8 sps:$4 sm:$0xff]  }
  0x28   : > { %v600_v39 = vrot.slane %v599_v31, 4  ;;  %v591_v44 = vsel %vm4489_vm4, %v586_v38, %v590_v36  ;;  %v977_v58 = vshrl.u32 %v3668_v52, 16  ;;  %v980_v59 = vshll.u32 %v3668_v52, 16  ;;  %v3676_v9 = vld [vmem:[%s4459_s30 + $0xb8] sm:$0xf] }
  0x29   : > { %v972_v61 = vshll.u32 %v3667_v54, 16  ;;  %v986_v62 = vshll.u32 %v3669_v55, 16  ;;  %v965_v1 = vrot.slane %v963_v56, 4  ;;  %v968_v2 = vrot.slane %v966_v57, 5  ;;  %v3671_v12 = vld [vmem:[%s4459_s30 + $0xa4] sm:$0x1] }
  0x2a   : > { %v605_v45 = vsel %vm4489_vm4, %v600_v39, %v604_v41  ;;  %v979_v3 = vrot.slane %v977_v58, 4  ;;  %v982_v4 = vrot.slane %v980_v59, 5  ;;  %v991_v6 = vshrl.u32 %v3670_v63, 16  ;;  %v3673_v13 = vld [vmem:[%s4459_s30 + $0xac] sm:$0x1] }
  0x2b   : > { %4003 = vmatmul.mubr.msk.bf16.gmra.mrb[4].mxu0 %vm293_vm1, %v4359_v5  ;;  %v3627_v46 = vcombine.low %v591_v44, %v605_v45  ;;  %v3672_v5 = vld [vmem:[%s4459_s30 + $0xa8] sm:$0xf]  ;;  %v994_v7 = vshll.u32 %v3670_v63, 16  ;;  %v1101_v16 = vsel %vm306_vm0, %v3682_v53, 0  ;;  %v974_v17 = vrot.slane %v972_v61, 5 }
  0x2c   : > { %4008 = vmatprep.mubr.msk.bf16.mxu0 %vm293_vm1, %v3624_v10  ;;  %v969_v10 = vor.u32 %v968_v2, %v965_v1  ;;  %v983_v11 = vor.u32 %v982_v4, %v979_v3  ;;  %v1005_v14 = vshrl.u32 %v3672_v5, 16  ;;  %v1008_v15 = vshll.u32 %v3672_v5, 16  ;;  %v4365_v27 = vld [vmem:[%s4459_s30 + $0xe8] ss:$8 sps:$4 sm:$0xff]   ;;  %v4366_v32 = vld [vmem:[%s4459_s30 + $0xf8] ss:$8 sps:$4 sm:$0xff]  }
  0x2d   : > { %v988_v18 = vrot.slane %v986_v62, 5  ;;  %v1019_v19 = vshrl.u32 %v3674_v8, 16  ;;  %v1022_v20 = vshll.u32 %v3674_v8, 16  ;;  %v1033_v21 = vshrl.u32 %v3676_v9, 16  ;;  %v3699_v33 = vld [vmem:[%s5124_s1 + $0xc] sm:$0x3] }
  0x2e   : > { %v1036_v22 = vshll.u32 %v3676_v9, 16  ;;  %v993_v23 = vrot.slane %v991_v6, 4  ;;  %v996_v24 = vrot.slane %v994_v7, 5  ;;  %v1000_v25 = vshll.u32 %v3671_v12, 16  ;;  %v3678_v34 = vld [vmem:[%s4459_s30 + $0xc0] sm:$0xf] }
  0x2f   : > { %v1014_v26 = vshll.u32 %v3673_v13, 16  ;;  %v970_v28 = vrot.slane %v969_v10, 4  ;;  %v984_v29 = vrot.slane %v983_v11, 4  ;;  %v1007_v30 = vrot.slane %v1005_v14, 4  ;;  %v3680_v39 = vld [vmem:[%s4459_s30 + $0xc8] sm:$0xf] }
  0x30   : > { %v1010_v31 = vrot.slane %v1008_v15, 5  ;;  %v1024_v36 = vrot.slane %v1022_v20, 5  ;;  %v1038_v38 = vrot.slane %v1036_v22, 5  ;;  %v997_v41 = vor.u32 %v996_v24, %v993_v23  ;;  %v3677_v44 = vld [vmem:[%s4459_s30 + $0xbc] sm:$0x1] }
  0x31   : > { %v975_v45 = vsel %vm4489_vm4, %v970_v28, %v974_v17  ;;  %v1047_v49 = vshrl.u32 %v3678_v34, 16  ;;  %v1064_v52 = vshll.u32 %v3680_v39, 16  ;;  %v1042_v57 = vshll.u32 %v3677_v44, 16  ;;  %v3679_v58 = vld [vmem:[%s4459_s30 + $0xc4] sm:$0x1] }
  0x32   : > { %v3681_v62 = vld [vmem:[%s4459_s30 + $0xcc] sm:$0x1]  ;;  %v1056_v8 = vshll.u32 %v3679_v58, 16  ;;  %v3716_v22 = vld [vmem:[%s5124_s1 + $0xe] sm:$0x3] }
  0x33   : > { %4009 = vmatmul.mubr.msk.bf16.vlgmr.msra.gmra.mrb[0].mxu0 %vm293_vm1, %v3625_v35  ;;  %v1021_v35 = vrot.slane %v1019_v19, 4  ;;  %v1049_v63 = vrot.slane %v1047_v49, 4  ;;  %v1066_v2 = vrot.slane %v1064_v52, 5  ;;  %v1044_v6 = vrot.slane %v1042_v57, 5  ;;  %v3725_v28 = vld [vmem:[%s4459_s30 + $0x8] sm:$0xf] }
  0x34   : > { %4017 = vmatpush3.bf16.msra.mxu0 %v752_v42  ;;  %4012 = vmatprep.mubr.msk.bf16.mxu0 %vm293_vm1, %v3626_v37  ;;  %v1035_v37 = vrot.slane %v1033_v21, 4  ;;  %v1002_v42 = vrot.slane %v1000_v25, 5  ;;  %v1070_v12 = vshll.u32 %v3681_v62, 16  ;;  %v1220_v21 = vsel %vm306_vm0, %v3699_v33, 0  ;;  %v3733_v52 = vld [vmem:[%s4459_s30 + $0x28] sm:$0xf] }
  0x35   : > { %4326 = vmatprep.subr.msk.bf16.mxu0 %vm306_vm0, %v3657_v43  ;;  %v3675_v43 = vld [vmem:[%s4459_s30 + $0xb4] sm:$0x1]  ;;  %v1025_v54 = vor.u32 %v1024_v36, %v1021_v35  ;;  %v4373_v58 = vld [vmem:[%s4459_s30 + $0x60] ss:$8 sps:$4 sm:$0xff]  }
  0x36   : > { %v1028_v55 = vshll.u32 %v3675_v43, 16  ;;  %v1039_v56 = vor.u32 %v1038_v38, %v1035_v37  ;;  %v1072_v20 = vrot.slane %v1070_v12, 5  ;;  %v4371_v37 = vld [vmem:[%s4459_s30 + $0x38] ss:$8 sps:$4 sm:$0xff]   ;;  %v3726_v38 = vld [vmem:[%s4459_s30 + $0xc] sm:$0x1] }
  0x37   : > { %v1026_v3 = vrot.slane %v1025_v54, 4 }
  0x38   : > { %v1030_v4 = vrot.slane %v1028_v55, 5  ;;  %v1040_v5 = vrot.slane %v1039_v56, 4 }
  0x3a   : > { %v1031_v13 = vsel %vm4489_vm4, %v1026_v3, %v1030_v4  ;;  %v1045_v14 = vsel %vm4489_vm4, %v1040_v5, %v1044_v6  ;;  %v3732_v5 = vld [vmem:[%s4459_s30 + $0x24] sm:$0x1] }
  0x3b   : > { %4013 = vmatmul.mubr.msk.bf16.gmra.mrb[4].mxu0 %vm293_vm1, %v3627_v46  ;;  %v989_v46 = vsel %vm4489_vm4, %v984_v29, %v988_v18  ;;  %v3685_v17 = vcombine.low %v1031_v13, %v1045_v14  ;;  %v4370_v29 = vld [vmem:[%s4459_s30 + $0x28] ss:$8 sps:$4 sm:$0xff]  }
  0x3c   : > { %4018 = vmatprep.mubr.msk.bf16.mxu0 %vm293_vm1, %v4360_v47  ;;  %v1011_v47 = vor.u32 %v1010_v31, %v1007_v30  ;;  %v3683_v59 = vcombine.low %v975_v45, %v989_v46  ;;  %v3727_v30 = vld [vmem:[%s4459_s30 + $0x10] sm:$0xf]  ;;  %v1339_v31 = vsel %vm306_vm0, %v3716_v22, 0  ;;  %v3729_v45 = vld [vmem:[%s4459_s30 + $0x18] sm:$0xf] }
  0x3d   : > { %v1445_v35 = vshrl.u32 %v3727_v30, 16  ;;  %v1448_v36 = vshll.u32 %v3727_v30, 16  ;;  %v4372_v46 = vld [vmem:[%s4459_s30 + $0x50] ss:$8 sps:$4 sm:$0xff]   ;;  %v1462_v55 = vshll.u32 %v3729_v45, 16 }
  0x3e   : > { %v1012_v61 = vrot.slane %v1011_v47, 4  ;;  %v3731_v47 = vld [vmem:[%s4459_s30 + $0x20] sm:$0xf] }
  0x3f   : > { %v1447_v43 = vrot.slane %v1445_v35, 4  ;;  %v1450_v44 = vrot.slane %v1448_v36, 5  ;;  %v1473_v56 = vshrl.u32 %v3731_v47, 16  ;;  %v1476_v57 = vshll.u32 %v3731_v47, 16 }
  0x40   : > { %v1464_v6 = vrot.slane %v1462_v55, 5 }
  0x41   : > { %v1451_v54 = vor.u32 %v1450_v44, %v1447_v43 }
  0x43   : > { %4019 = vmatmul.mubr.msk.bf16.vlgmr.msra.gmra.mrb[0].mxu0 %vm293_vm1, %v4361_v48  ;;  %v1016_v48 = vrot.slane %v1014_v26, 5  ;;  %v4368_v26 = vld [vmem:[%s4459_s30 + $0x8] ss:$8 sps:$4 sm:$0xff]   ;;  %v1452_v4 = vrot.slane %v1451_v54, 4 }
  0x44   : > { %4027 = vmatpush3.bf16.msra.mxu0 %v871_v50  ;;  %4022 = vmatprep.mubr.msk.bf16.mxu0 %vm293_vm1, %v4362_v51  ;;  %v1050_v50 = vshll.u32 %v3678_v34, 16  ;;  %v1061_v51 = vshrl.u32 %v3680_v39, 16  ;;  %v1434_v34 = vshll.u32 %v3725_v28, 16 }
  0x45   : > { %4327 = vmatprep.subr.msk.bf16.mxu0 %vm306_vm0, %v3682_v53  ;;  %v4367_v53 = vld [vmem:[%s4459_s30 + $0x108] ss:$8 sps:$4 sm:$0xff]   ;;  %v1017_v9 = vsel %vm4489_vm4, %v1012_v61, %v1016_v48  ;;  %v1440_v48 = vshll.u32 %v3726_v38, 16 }
  0x46   : > { %v1063_v1 = vrot.slane %v1061_v51, 4  ;;  %v1459_v51 = vshrl.u32 %v3729_v45, 16 }
  0x48   : > { %v1067_v11 = vor.u32 %v1066_v2, %v1063_v1  ;;  %v3730_v2 = vld [vmem:[%s4459_s30 + $0x1c] sm:$0x1]  ;;  %v1461_v3 = vrot.slane %v1459_v51, 4 }
  0x4a   : > { %v1068_v19 = vrot.slane %v1067_v11, 4  ;;  %v3737_v11 = vld [vmem:[%s4459_s30 + $0x38] sm:$0xf] }
  0x4b   : > { %4023 = vmatmul.mubr.msk.bf16.gmra.mrb[4].mxu0 %vm293_vm1, %v4363_v60  ;;  %v998_v60 = vrot.slane %v997_v41, 4  ;;  %v1436_v41 = vrot.slane %v1434_v34, 5  ;;  %v4375_v34 = vld [vmem:[%s4459_s30 + $0x80] ss:$8 sps:$4 sm:$0xff]  }
  0x4c   : > { %4028 = vmatprep.mubr.msk.bf16.mxu0 %vm293_vm1, %v4364_v0  ;;  %v1052_v0 = vrot.slane %v1050_v50, 5  ;;  %v1073_v24 = vsel %vm4489_vm4, %v1068_v19, %v1072_v20  ;;  %v3734_v19 = vld [vmem:[%s4459_s30 + $0x2c] sm:$0x1]  ;;  %v3736_v20 = vld [vmem:[%s4459_s30 + $0x34] sm:$0x1] }
  0x4d   : > { %v1003_v7 = vsel %vm4489_vm4, %v998_v60, %v1002_v42  ;;  %v3728_v42 = vld [vmem:[%s4459_s30 + $0x14] sm:$0x1]  ;;  %v1490_v60 = vshll.u32 %v3733_v52, 16  ;;  %v1496_v30 = vshll.u32 %v3734_v19, 16 }
  0x4e   : > { %v1053_v10 = vor.u32 %v1052_v0, %v1049_v63  ;;  %v3684_v15 = vcombine.low %v1003_v7, %v1017_v9  ;;  %v1454_v50 = vshll.u32 %v3728_v42, 16  ;;  %v1442_v0 = vrot.slane %v1440_v48, 5 }
  0x4f   : > { %v1475_v7 = vrot.slane %v1473_v56, 4  ;;  %v1492_v13 = vrot.slane %v1490_v60, 5 }
  0x50   : > { %v1054_v18 = vrot.slane %v1053_v10, 4  ;;  %v1456_v1 = vrot.slane %v1454_v50, 5  ;;  %v4374_v10 = vld [vmem:[%s4459_s30 + $0x70] ss:$8 sps:$4 sm:$0xff]  }
  0x53   : > { %4029 = vmatmul.mubr.msk.bf16.vlgmr.msra.gmra.mrb[0].mxu0 %vm293_vm1, %v4365_v27  ;;  %v4369_v27 = vld [vmem:[%s4459_s30 + $0x18] ss:$8 sps:$4 sm:$0xff]  }
  0x54   : > { %4037 = vmatpush3.bf16.msra.mxu0 %v1101_v16  ;;  %4032 = vmatprep.mubr.msk.bf16.mxu0 %vm293_vm1, %v4366_v32  ;;  %v1058_v16 = vrot.slane %v1056_v8, 5  ;;  %v3741_v32 = vld [vmem:[%s5124_s1 + $0x10] sm:$0x3]  ;;  %v1478_v8 = vrot.slane %v1476_v57, 5 }
  0x55   : > { %4328 = vmatprep.subr.msk.bf16.mxu0 %vm306_vm0, %v3699_v33  ;;  %v1431_v33 = vshrl.u32 %v3725_v28, 16  ;;  %v1569_v9 = vsel %vm306_vm0, %v3741_v32, 0 }
  0x56   : > { %v1059_v23 = vsel %vm4489_vm4, %v1054_v18, %v1058_v16  ;;  %v3739_v16 = vld [vmem:[%s4459_s30 + $0x40] sm:$0xf]  ;;  %v1482_v18 = vshll.u32 %v3732_v5, 16 }
  0x57   : > { %v3686_v25 = vcombine.low %v1059_v23, %v1073_v24  ;;  %v1433_v39 = vrot.slane %v1431_v33, 4  ;;  %v1465_v23 = vor.u32 %v1464_v6, %v1461_v3  ;;  %v1479_v24 = vor.u32 %v1478_v8, %v1475_v7  ;;  %v4688_v6 = vld [vmem:[%s5126_s3] sm:$0xf] }
  0x58   : > { %v1532_v28 = vshll.u32 %v3739_v16, 16  ;;  %v1484_v38 = vrot.slane %v1482_v18, 5  ;;  %v4400_v3 = vmov 0   ;;  %v4695_v7 = vld [vmem:[%s5125_s2] ss:$0 sm:$0xff] }
  0x59   : > { %v1437_v49 = vor.u32 %v1436_v41, %v1433_v39  ;;  %v1466_v36 = vrot.slane %v1465_v23, 4  ;;  %v3738_v39 = vld [vmem:[%s4459_s30 + $0x3c] sm:$0x1]  ;;  %1691 = vst.msk [vmem:[#allocation2 + $0x18] sm:$0xf] %vm1683_vm5, %v4400_v3 }
  0x5a   : > { %v1534_v44 = vrot.slane %v1532_v28, 5  ;;  %v1524_v51 = vshll.u32 %v3738_v39, 16  ;;  %1692 = vst.msk [vmem:[#allocation2 + $0x1c] sm:$0x1] %vm1685_vm6, %v4400_v3  ;;  %1686 = vst.msk [vmem:[#allocation2 + $0x4] sm:$0x1] %vm1685_vm6, %v4400_v3 }
  0x5b   : > { %4033 = vmatmul.mubr.msk.bf16.gmra.mrb[4].mxu0 %vm293_vm1, %v4367_v53  ;;  %v3735_v53 = vld [vmem:[%s4459_s30 + $0x30] sm:$0xf]  ;;  %v1438_v63 = vrot.slane %v1437_v49, 4  ;;  %v3740_v49 = vld [vmem:[%s4459_s30 + $0x44] sm:$0x1] }
  0x5c   : > { %4038 = vmatprep.mubr.msk.bf16.mxu0 %vm293_vm1, %v3683_v59  ;;  %v1487_v59 = vshrl.u32 %v3733_v52, 16  ;;  %v1501_v61 = vshrl.u32 %v3735_v53, 16  ;;  %v1504_v62 = vshll.u32 %v3735_v53, 16  ;;  %v1538_v55 = vshll.u32 %v3740_v49, 16  ;;  %1684 = vst.msk [vmem:[#allocation2] sm:$0xf] %vm1683_vm5, %v4400_v3 }
  0x5d   : > { %1687 = vst.msk [vmem:[#allocation2 + $0x8] sm:$0xf] %vm1683_vm5, %v4400_v3  ;;  %1689 = vst.msk [vmem:[#allocation2 + $0x10] sm:$0xf] %vm1683_vm5, %v4400_v3 }
  0x5e   : > { %v1489_v12 = vrot.slane %v1487_v59, 4  ;;  %v1503_v14 = vrot.slane %v1501_v61, 4  ;;  %v1526_v59 = vrot.slane %v1524_v51, 5  ;;  %1688 = vst.msk [vmem:[#allocation2 + $0xc] sm:$0x1] %vm1685_vm6, %v4400_v3 }
  0x5f   : > { %1690 = vst.msk [vmem:[#allocation2 + $0x14] sm:$0x1] %vm1685_vm6, %v4400_v3  ;;  %1694 = vst.msk [vmem:[#allocation2 + $0x24] sm:$0x1] %vm1685_vm6, %v4400_v3 }
  0x60   : > { %1693 = vst.msk [vmem:[#allocation2 + $0x20] sm:$0xf] %vm1683_vm5, %v4400_v3  ;;  %1695 = vst.msk [vmem:[#allocation2 + $0x28] sm:$0xf] %vm1683_vm5, %v4400_v3 }
  0x61   : > { %1696 = vst.msk [vmem:[#allocation2 + $0x2c] sm:$0x1] %vm1685_vm6, %v4400_v3  ;;  %1698 = vst.msk [vmem:[#allocation2 + $0x34] sm:$0x1] %vm1685_vm6, %v4400_v3 }
  0x62   : > { %1697 = vst.msk [vmem:[#allocation2 + $0x30] sm:$0xf] %vm1683_vm5, %v4400_v3  ;;  %1699 = vst.msk [vmem:[#allocation2 + $0x38] sm:$0xf] %vm1683_vm5, %v4400_v3 }
  0x63   : > { %4039 = vmatmul.mubr.msk.bf16.vlgmr.msra.gmra.mrb[0].mxu0 %vm293_vm1, %v3684_v15  ;;  %v1506_v15 = vrot.slane %v1504_v62, 5  ;;  %1700 = vst.msk [vmem:[#allocation2 + $0x3c] sm:$0x1] %vm1685_vm6, %v4400_v3  ;;  %1702 = vst.msk [vmem:[#allocation2 + $0x44] sm:$0x1] %vm1685_vm6, %v4400_v3 }
  0x64   : > { %4047 = vmatpush3.bf16.msra.mxu0 %v1220_v21  ;;  %4042 = vmatprep.mubr.msk.bf16.mxu0 %vm293_vm1, %v3685_v17  ;;  %v1468_v17 = vshll.u32 %v3730_v2, 16  ;;  %v1443_v21 = vsel %vm4489_vm4, %v1438_v63, %v1442_v0  ;;  %v1540_v63 = vrot.slane %v1538_v55, 5  ;;  %1701 = vst.msk [vmem:[#allocation2 + $0x40] sm:$0xf] %vm1683_vm5, %v4400_v3  ;;  %1703 = vst.msk [vmem:[#allocation2 + $0x48] sm:$0xf] %vm1683_vm5, %v4400_v3 }
  0x65   : > { %4329 = vmatprep.subr.msk.bf16.mxu0 %vm306_vm0, %v3716_v22  ;;  %v1457_v22 = vsel %vm4489_vm4, %v1452_v4, %v1456_v1  ;;  %1704 = vst.msk [vmem:[#allocation2 + $0x4c] sm:$0x1] %vm1685_vm6, %v4400_v3  ;;  %v3759_v4 = vld [vmem:[%s5126_s3 + $0x4] sm:$0xf]  ;;  %v4697_v8 = vld [vmem:[#allocation2] sm:$0xf] }
  0x66   : > { %v1470_v33 = vrot.slane %v1468_v17, 5  ;;  %v3742_v35 = vcombine.low %v1443_v21, %v1457_v22  ;;  %v2030_v5 = vsel %vm2028_vm7, %v3759_v4, 0  ;;  %4332 = vmatprep.subr.msk.bf16.mxu1 %vm2028_vm7, %v3759_v4  ;;  %v1893_v18 = vshll.u32 %v4697_v8, 16  ;;  %v4705_v21 = vld [vmem:[#allocation2 + $0x4] sm:$0x1] }
  0x67   : > { %4177 = vmatpush3.bf16.msra.mxu1 %v2030_v5 }
  0x68   : > { %v1471_v50 = vsel %vm4489_vm4, %v1466_v36, %v1470_v33  ;;  %4333 = vmatprep.subr.msk.bf16.mxu1 %vm2028_vm7, %v4688_v6 }
  0x6b   : > { %4043 = vmatmul.mubr.msk.bf16.gmra.mrb[4].mxu0 %vm293_vm1, %v3686_v25  ;;  %v1515_v25 = vshrl.u32 %v3737_v11, 16 }
  0x6c   : > { %4048 = vmatprep.mubr.msk.bf16.mxu0 %vm293_vm1, %v4368_v26  ;;  %v1518_v26 = vshll.u32 %v3737_v11, 16 }
  0x6d   : > { %v1517_v41 = vrot.slane %v1515_v25, 4 }
  0x6e   : > { %v1520_v42 = vrot.slane %v1518_v26, 5 }
  0x70   : > { %v1521_v53 = vor.u32 %v1520_v42, %v1517_v41 }
  0x72   : > { %v1522_v61 = vrot.slane %v1521_v53, 4 }
  0x73   : > { %4049 = vmatmul.mubr.msk.bf16.vlgmr.msra.gmra.mrb[0].mxu0 %vm293_vm1, %v4369_v27  ;;  %v1529_v27 = vshrl.u32 %v3739_v16, 16 }
  0x74   : > { %4057 = vmatpush3.bf16.msra.mxu0 %v1339_v31  ;;  %4052 = vmatprep.mubr.msk.bf16.mxu0 %vm293_vm1, %v4370_v29  ;;  %v1493_v29 = vor.u32 %v1492_v13, %v1489_v12  ;;  %v1507_v31 = vor.u32 %v1506_v15, %v1503_v14  ;;  %v1527_v0 = vsel %vm4489_vm4, %v1522_v61, %v1526_v59  ;;  %v1890_v14 = vshrl.u32 %v4697_v8, 16  ;;  %v1842_v61 = vld [vmem:[#allocation2 + $0x20] sm:$0xf] }
  0x75   : > { %4330 = vmatprep.subr.msk.bf16.mxu0 %vm306_vm0, %v3741_v32  ;;  %v1510_v32 = vshll.u32 %v3736_v20, 16  ;;  %v1531_v43 = vrot.slane %v1529_v27, 4 }
  0x76   : > { %v1494_v45 = vrot.slane %v1493_v29, 4  ;;  %v1508_v47 = vrot.slane %v1507_v31, 4  ;;  %v4710_v31 = vrot.slane %v1893_v18, 5 }
  0x77   : > { %v1512_v48 = vrot.slane %v1510_v32, 5  ;;  %v1535_v54 = vor.u32 %v1534_v44, %v1531_v43 }
  0x79   : > { %v1513_v57 = vsel %vm4489_vm4, %v1508_v47, %v1512_v48  ;;  %v1536_v62 = vrot.slane %v1535_v54, 4  ;;  %v1821_v47 = vld [vmem:[#allocation2 + $0x8] sm:$0xf]  ;;  %v1827_v48 = vld [vmem:[#allocation2 + $0xc] sm:$0x1] }
  0x7b   : > { %4053 = vmatmul.mubr.msk.bf16.gmra.mrb[4].mxu0 %vm293_vm1, %v4371_v37  ;;  %v1480_v37 = vrot.slane %v1479_v24, 4  ;;  %v1541_v1 = vsel %vm4489_vm4, %v1536_v62, %v1540_v63  ;;  %v1899_v24 = vshll.u32 %v4705_v21, 16 }
  0x7c   : > { %4058 = vmatprep.mubr.msk.bf16.mxu0 %vm293_vm1, %v4372_v46  ;;  %v1498_v46 = vrot.slane %v1496_v30, 5  ;;  %v3745_v2 = vcombine.low %v1527_v0, %v1541_v1  ;;  %v4708_v30 = vrot.slane %v1890_v14, 4  ;;  %v1845_v1 = vld [vmem:[#allocation2 + $0x24] sm:$0x1] }
  0x7d   : > { %v1485_v52 = vsel %vm4489_vm4, %v1480_v37, %v1484_v38  ;;  %v1836_v37 = vld [vmem:[#allocation2 + $0x18] sm:$0xf]  ;;  %v1839_v38 = vld [vmem:[#allocation2 + $0x1c] sm:$0x1] }
  0x7e   : > { %v1499_v56 = vsel %vm4489_vm4, %v1494_v45, %v1498_v46 }
  0x7f   : > { %v3744_v60 = vcombine.low %v1499_v56, %v1513_v57 }
  0x83   : > { %4059 = vmatmul.mubr.msk.bf16.vlgmr.msra.gmra.mrb[0].mxu0 %vm293_vm1, %v4373_v58  ;;  %v3743_v58 = vcombine.low %v1471_v50, %v1485_v52 }
  0x84   : > { %4067 = vmatpush3.bf16.msra.mxu0 %v1569_v9  ;;  %4062 = vmatprep.mubr.msk.bf16.mxu0 %vm293_vm1, %v4374_v10 }
  0x85   : > { %4331 = vmatprep.subr.msk.bf16.mxu0 %vm2028_vm7, %v3759_v4 }
  0x8b   : > { %4063 = vmatmul.mubr.msk.bf16.gmra.mrb[4].mxu0 %vm293_vm1, %v4375_v34 }
  0x8c   : > { %4068 = vmatprep.mubr.msk.bf16.mxu0 %vm293_vm1, %v3742_v35 }
  0x93   : > { %4069 = vmatmul.mubr.msk.bf16.vlgmr.msra.gmra.mrb[0].mxu0 %vm293_vm1, %v3743_v58 }
  0x94   : > { %4072 = vmatprep.mubr.msk.bf16.mxu0 %vm293_vm1, %v3744_v60  ;;  %4077 = vmatpush3.bf16.msra.mxu0 %v2030_v5 }
  0x9b   : > { %4073 = vmatmul.mubr.msk.bf16.gmra.mrb[4].mxu0 %vm293_vm1, %v3745_v2 }
 0x166   : > { %v4070_v9 = vpop.f32.mrb[0].mxu0 }
 0x167   : > { %v1653_v10 = vadd.f32 %v4070_v9, %v4695_v7  ;;  %v1605_v11 = vpop.f32.mrb[1].mxu0 }
 0x168   : > { %v1651_v12 = vadd.f32 %v4695_v7, %v1605_v11  ;;  %v4071_v13 = vpop.f32.mrb[2].mxu0  ;;  %v1833_v11 = vld [vmem:[#allocation2 + $0x14] sm:$0x1] }
 0x169   : > { %vm1661_vm10 = vcmp.ge.f32.partialorder %v1653_v10, 0.0  ;;  %v1669_v15 = vmul.f32 0.01, %v1653_v10  ;;  %v1654_v16 = vadd.f32 %v4071_v13, %v4695_v7  ;;  %v1608_v17 = vpop.f32.mrb[3].mxu0 }
 0x16a   : > { %vm1659_vm11 = vcmp.ge.f32.partialorder %v1651_v12, 0.0  ;;  %v1667_v19 = vmul.f32 0.01, %v1651_v12  ;;  %v1652_v20 = vadd.f32 %v4695_v7, %v1608_v17 }
 0x16b   : > { %v1677_v22 = vsel %vm1661_vm10, %v1653_v10, %v1669_v15  ;;  %vm1662_vm12 = vcmp.ge.f32.partialorder %v1654_v16, 0.0  ;;  %v1670_v23 = vmul.f32 0.01, %v1654_v16  ;;  %v1830_v10 = vld [vmem:[#allocation2 + $0x10] sm:$0xf]  ;;  %vm2222_vm10 = vcmask 1046532  }
 0x16c   : > { %v3885_v25 = vpack.c.bf16 %v1677_v22, %v1677_v22  ;;  %v1675_v26 = vsel %vm1659_vm11, %v1651_v12, %v1667_v19  ;;  %vm1660_vm13 = vcmp.ge.f32.partialorder %v1652_v20, 0.0  ;;  %v1668_v27 = vmul.f32 0.01, %v1652_v20  ;;  %vm4862_vm11 = vmor %vm2221_vm9, %vm2222_vm10 }
 0x16d   : > { %v3883_v28 = vpack.c.bf16 %v1675_v26, %v1675_v26  ;;  %v1678_v29 = vsel %vm1662_vm12, %v1654_v16, %v1670_v23 }
 0x16e   : > { %v1754_v32 = vshrl.u32 %v3885_v25, 16  ;;  %v1757_v33 = vshll.u32 %v3885_v25, 16  ;;  %v3886_v34 = vpack.c.bf16 %v1678_v29, %v1678_v29  ;;  %v1676_v35 = vsel %vm1660_vm13, %v1652_v20, %v1668_v27  ;;  %v4074_v36 = vpop.f32.mrb[4].mxu0 }
 0x16f   : > { %v1738_v39 = vshrl.u32 %v3883_v28, 16  ;;  %v1741_v41 = vshll.u32 %v3883_v28, 16  ;;  %v3884_v42 = vpack.c.bf16 %v1676_v35, %v1676_v35  ;;  %v1657_v43 = vadd.f32 %v4074_v36, %v4695_v7  ;;  %v1621_v44 = vpop.f32.mrb[5].mxu0 }
 0x170   : > { %v1756_v45 = vrot.slane %v1754_v32, 7  ;;  %v1762_v49 = vshrl.u32 %v3886_v34, 16  ;;  %v1765_v50 = vshll.u32 %v3886_v34, 16  ;;  %v1655_v51 = vadd.f32 %v4695_v7, %v1621_v44  ;;  %v4075_v52 = vpop.f32.mrb[6].mxu0 }
 0x171   : > { %v1740_v54 = vrot.slane %v1738_v39, 7  ;;  %v1746_v55 = vshrl.u32 %v3884_v42, 16  ;;  %v1749_v56 = vshll.u32 %v3884_v42, 16  ;;  %vm1665_vm2 = vcmp.ge.f32.partialorder %v1657_v43, 0.0  ;;  %v1624_v57 = vpop.f32.mrb[7].mxu0 }
 0x172   : > { %v1759_v58 = vor.u32 %v1757_v33, %v1756_v45  ;;  %v1760_v59 = vrot.slane %v1756_v45, 4  ;;  %v1764_v60 = vrot.slane %v1762_v49, 7  ;;  %v1673_v62 = vmul.f32 0.01, %v1657_v43 }
 0x173   : > { %v1743_v63 = vor.u32 %v1741_v41, %v1740_v54  ;;  %v1744_v0 = vrot.slane %v1740_v54, 4  ;;  %v1748_v2 = vrot.slane %v1746_v55, 7  ;;  %vm1663_vm3 = vcmp.ge.f32.partialorder %v1655_v51, 0.0  ;;  %v1863_v41 = vld [vmem:[#allocation2 + $0x3c] sm:$0x1] }
 0x174   : > { %v1837_v3 = vsel %vm4715_vm14, %v1759_v58, %v1836_v37  ;;  %v1840_v4 = vsel %vm4722_vm15, %v1760_v59, %v1839_v38  ;;  %v1767_v5 = vor.u32 %v1765_v50, %v1764_v60  ;;  %v1768_v9 = vrot.slane %v1764_v60, 4  ;;  %v1860_v37 = vld [vmem:[#allocation2 + $0x38] sm:$0xf] }
 0x175   : > { %1838 = vst [vmem:[#allocation2 + $0x18] sm:$0xf] %v1837_v3  ;;  %1841 = vst [vmem:[#allocation2 + $0x1c] sm:$0x1] %v1840_v4  ;;  %v1822_v12 = vsel %vm4715_vm14, %v1743_v63, %v1821_v47  ;;  %v1828_v13 = vsel %vm4722_vm15, %v1744_v0, %v1827_v48  ;;  %v1751_v14 = vor.u32 %v1749_v56, %v1748_v2  ;;  %v1752_v15 = vrot.slane %v1748_v2, 4 }
 0x176   : > { %1823 = vst [vmem:[#allocation2 + $0x8] sm:$0xf] %v1822_v12  ;;  %1829 = vst [vmem:[#allocation2 + $0xc] sm:$0x1] %v1828_v13  ;;  %v1843_v16 = vsel %vm4715_vm14, %v1767_v5, %v1842_v61  ;;  %v1846_v17 = vsel %vm4722_vm15, %v1768_v9, %v1845_v1  ;;  %v1681_v18 = vsel %vm1665_vm2, %v1657_v43, %v1673_v62  ;;  %v1671_v19 = vmul.f32 0.01, %v1655_v51 }
 0x177   : > { %1844 = vst [vmem:[#allocation2 + $0x20] sm:$0xf] %v1843_v16  ;;  %1847 = vst [vmem:[#allocation2 + $0x24] sm:$0x1] %v1846_v17  ;;  %v1831_v20 = vsel %vm4715_vm14, %v1751_v14, %v1830_v10  ;;  %v1834_v22 = vsel %vm4722_vm15, %v1752_v15, %v1833_v11  ;;  %v3889_v23 = vpack.c.bf16 %v1681_v18, %v1681_v18  ;;  %v4750_v39 = vrot.slane %v1899_v24, 5 }
 0x178   : > { %v1658_v25 = vadd.f32 %v4075_v52, %v4695_v7  ;;  %1832 = vst [vmem:[#allocation2 + $0x10] sm:$0xf] %v1831_v20  ;;  %1835 = vst [vmem:[#allocation2 + $0x14] sm:$0x1] %v1834_v22  ;;  %v1679_v26 = vsel %vm1663_vm3, %v1655_v51, %v1671_v19  ;;  %v1656_v27 = vadd.f32 %v4695_v7, %v1624_v57  ;;  %v1848_v7 = vld [vmem:[#allocation2 + $0x28] sm:$0xf] }
 0x179   : > { %v1896_v28 = vor.u32 %v4710_v31, %v4708_v30  ;;  %v1786_v29 = vshrl.u32 %v3889_v23, 16  ;;  %v3887_v32 = vpack.c.bf16 %v1679_v26, %v1679_v26  ;;  %v1789_v36 = vshll.u32 %v3889_v23, 16  ;;  %v1851_v51 = vld [vmem:[#allocation2 + $0x2c] sm:$0x1]  ;;  %v1866_v4 = vld [vmem:[#allocation2 + $0x40] sm:$0xf] }
 0x17a   : > { %vm1666_vm5 = vcmp.ge.f32.partialorder %v1658_v25, 0.0  ;;  %v1674_v33 = vmul.f32 0.01, %v1658_v25  ;;  %vm1664_vm6 = vcmp.ge.f32.partialorder %v1656_v27, 0.0  ;;  %v1672_v34 = vmul.f32 0.01, %v1656_v27 }
 0x17b   : > { %v1788_v35 = vrot.slane %v1786_v29, 7  ;;  %v1770_v38 = vshrl.u32 %v3887_v32, 16  ;;  %v1773_v42 = vshll.u32 %v3887_v32, 16  ;;  %v4752_v30 = vrot.slane %v1896_v28, 4  ;;  %v1869_v5 = vld [vmem:[#allocation2 + $0x44] sm:$0x1] }
 0x17c   : > { %v1682_v43 = vsel %vm1666_vm5, %v1658_v25, %v1674_v33  ;;  %v1680_v44 = vsel %vm1664_vm6, %v1656_v27, %v1672_v34  ;;  %v4771_v1 = vld [vmem:[#allocation2 + $0x18] sm:$0xf]  ;;  %v1854_v9 = vld [vmem:[#allocation2 + $0x30] sm:$0xf]  ;;  %v1857_v10 = vld [vmem:[#allocation2 + $0x34] sm:$0x1] }
 0x17d   : > { %v1791_v31 = vor.u32 %v1789_v36, %v1788_v35  ;;  %v1792_v45 = vrot.slane %v1788_v35, 4  ;;  %v1772_v47 = vrot.slane %v1770_v38, 7  ;;  %v3890_v48 = vpack.c.bf16 %v1682_v43, %v1682_v43  ;;  %v4754_v49 = vld [vmem:[#allocation2 + $0x8] sm:$0xf]  ;;  %v4756_v50 = vld [vmem:[#allocation2 + $0xc] sm:$0x1] }
 0x17e   : > { %v3888_v52 = vpack.c.bf16 %v1680_v44, %v1680_v44  ;;  %v1904_v24 = vshrl.u32 %v4754_v49, 16  ;;  %v1907_v54 = vshll.u32 %v4754_v49, 16  ;;  %v1913_v55 = vshll.u32 %v4756_v50, 16  ;;  %v4780_v20 = vld [vmem:[#allocation2 + $0x1c] sm:$0x1] }
 0x17f   : > { %v1861_v56 = vsel %vm4715_vm14, %v1791_v31, %v1860_v37  ;;  %v1864_v57 = vsel %vm4722_vm15, %v1792_v45, %v1863_v41  ;;  %v1775_v58 = vor.u32 %v1773_v42, %v1772_v47  ;;  %v1776_v59 = vrot.slane %v1772_v47, 4  ;;  %v4765_v60 = vld [vmem:[#allocation2 + $0x10] sm:$0xf]  ;;  %v4777_v16 = vld [vmem:[#allocation2 + $0x14] sm:$0x1] }
 0x180   : > { %1862 = vst [vmem:[#allocation2 + $0x38] sm:$0xf] %v1861_v56  ;;  %1865 = vst [vmem:[#allocation2 + $0x3c] sm:$0x1] %v1864_v57  ;;  %v1794_v61 = vshrl.u32 %v3890_v48, 16  ;;  %v1797_v62 = vshll.u32 %v3890_v48, 16  ;;  %v1902_v0 = vsel %vm4489_vm4, %v4752_v30, %v4750_v39 }
 0x181   : > { %v1778_v63 = vshrl.u32 %v3888_v52, 16  ;;  %v1849_v2 = vsel %vm4715_vm14, %v1775_v58, %v1848_v7  ;;  %v1852_v3 = vsel %vm4722_vm15, %v1776_v59, %v1851_v51  ;;  %v1906_v11 = vrot.slane %v1904_v24, 4  ;;  %v4784_v29 = vld [vmem:[#allocation2 + $0x20] sm:$0xf]  ;;  %v4798_v44 = vld [vmem:[#allocation2 + $0x24] sm:$0x1] }
 0x182   : > { %v1909_v12 = vrot.slane %v1907_v54, 5  ;;  %1850 = vst [vmem:[#allocation2 + $0x28] sm:$0xf] %v1849_v2  ;;  %1853 = vst [vmem:[#allocation2 + $0x2c] sm:$0x1] %v1852_v3  ;;  %v1796_v13 = vrot.slane %v1794_v61, 7 }
 0x183   : > { %v1780_v14 = vrot.slane %v1778_v63, 7  ;;  %v1781_v15 = vshll.u32 %v3888_v52, 16  ;;  %v1918_v17 = vshrl.u32 %v4765_v60, 16  ;;  %v1915_v19 = vrot.slane %v1913_v55, 5 }
 0x184   : > { %v1910_v18 = vor.u32 %v1909_v12, %v1906_v11  ;;  %v1921_v22 = vshll.u32 %v4765_v60, 16  ;;  %v1932_v23 = vshrl.u32 %v4771_v1, 16  ;;  %v1799_v25 = vor.u32 %v1797_v62, %v1796_v13 }
 0x185   : > { %v1800_v26 = vrot.slane %v1796_v13, 4  ;;  %v1783_v27 = vor.u32 %v1781_v15, %v1780_v14  ;;  %v1784_v28 = vrot.slane %v1780_v14, 4  ;;  %v1920_v33 = vrot.slane %v1918_v17, 4 }
 0x186   : > { %v1911_v32 = vrot.slane %v1910_v18, 4  ;;  %v1923_v34 = vrot.slane %v1921_v22, 5  ;;  %v1927_v35 = vshll.u32 %v4777_v16, 16  ;;  %v1867_v36 = vsel %vm4715_vm14, %v1799_v25, %v1866_v4 }
 0x187   : > { %v1870_v37 = vsel %vm4722_vm15, %v1800_v26, %v1869_v5  ;;  %v1855_v38 = vsel %vm4715_vm14, %v1783_v27, %v1854_v9  ;;  %v1858_v39 = vsel %vm4722_vm15, %v1784_v28, %v1857_v10  ;;  %1868 = vst [vmem:[#allocation2 + $0x40] sm:$0xf] %v1867_v36  ;;  %v1934_v7 = vrot.slane %v1932_v23, 4  ;;  %v4814_v4 = vld [vmem:[#allocation2 + $0x38] sm:$0xf] }
 0x188   : > { %1871 = vst [vmem:[#allocation2 + $0x44] sm:$0x1] %v1870_v37  ;;  %1856 = vst [vmem:[#allocation2 + $0x30] sm:$0xf] %v1855_v38  ;;  %v1916_v41 = vsel %vm4489_vm4, %v1911_v32, %v1915_v19  ;;  %v1924_v42 = vor.u32 %v1923_v34, %v1920_v33  ;;  %v1935_v43 = vshll.u32 %v4771_v1, 16  ;;  %v1941_v46 = vshll.u32 %v4780_v20, 16 }
 0x189   : > { %1859 = vst [vmem:[#allocation2 + $0x34] sm:$0x1] %v1858_v39  ;;  %v3760_v30 = vcombine.low %v1902_v0, %v1916_v41  ;;  %v1946_v31 = vshrl.u32 %v4784_v29, 16  ;;  %v1949_v53 = vshll.u32 %v4784_v29, 16  ;;  %v4803_v48 = vld [vmem:[#allocation2 + $0x28] sm:$0xf] }
 0x18a   : > { %v1925_v45 = vrot.slane %v1924_v42, 4  ;;  %v1937_v47 = vrot.slane %v1935_v43, 5  ;;  %v4805_v51 = vld [vmem:[#allocation2 + $0x2c] sm:$0x1]  ;;  %v1929_v52 = vrot.slane %v1927_v35, 5  ;;  %v1955_v55 = vshll.u32 %v4798_v44, 16 }
 0x18b   : > { %4078 = vmatprep.mubr.msk.bf16.mxu0 %vm2015_vm8, %v3760_v30  ;;  %v1948_v24 = vrot.slane %v1946_v31, 4  ;;  %v1951_v54 = vrot.slane %v1949_v53, 5  ;;  %v1960_v57 = vshrl.u32 %v4803_v48, 16  ;;  %v1963_v58 = vshll.u32 %v4803_v48, 16  ;;  %v4822_v14 = vld [vmem:[#allocation2 + $0x3c] sm:$0x1] }
 0x18c   : > { %v1938_v56 = vor.u32 %v1937_v47, %v1934_v7  ;;  %v1943_v59 = vrot.slane %v1941_v46, 5  ;;  %v1969_v62 = vshll.u32 %v4805_v51, 16  ;;  %v1930_v63 = vsel %vm4489_vm4, %v1925_v45, %v1929_v52  ;;  %v3784_v47 = vld [vmem:[%s5126_s3 + $0x8] sm:$0xf]  ;;  %v2197_v52 = vld [vmem:[#allocation2] sm:$0xe] }
 0x18d   : > { %v1952_v61 = vor.u32 %v1951_v54, %v1948_v24  ;;  %v1962_v2 = vrot.slane %v1960_v57, 4  ;;  %v1965_v3 = vrot.slane %v1963_v58, 5  ;;  %v1957_v9 = vrot.slane %v1955_v55, 5  ;;  %v2198_v24 = vld [vmem:[#allocation2 + $0x8] sm:$0xe] }
 0x18e   : > { %v1939_v0 = vrot.slane %v1938_v56, 4  ;;  %v1971_v19 = vrot.slane %v1969_v62, 5  ;;  %v1988_v23 = vshrl.u32 %v4814_v4, 16  ;;  %v1991_v28 = vshll.u32 %v4814_v4, 16 }
 0x18f   : > { %v1953_v5 = vrot.slane %v1952_v61, 4  ;;  %v4816_v10 = vld [vmem:[#allocation2 + $0x30] sm:$0xf]  ;;  %v1966_v13 = vor.u32 %v1965_v3, %v1962_v2  ;;  %v1997_v37 = vshll.u32 %v4822_v14, 16  ;;  %v2130_v53 = vsel %vm2028_vm7, %v4688_v6, 0 }
 0x190   : > { %v4818_v11 = vld [vmem:[#allocation2 + $0x34] sm:$0x1]  ;;  %v1944_v12 = vsel %vm4489_vm4, %v1939_v0, %v1943_v59  ;;  %v1974_v15 = vshrl.u32 %v4816_v10, 16  ;;  %v1977_v17 = vshll.u32 %v4816_v10, 16  ;;  %v1990_v33 = vrot.slane %v1988_v23, 4 }
 0x191   : > { %v3761_v18 = vcombine.low %v1930_v63, %v1944_v12  ;;  %v1983_v22 = vshll.u32 %v4818_v11, 16  ;;  %v1967_v25 = vrot.slane %v1966_v13, 4  ;;  %v1958_v32 = vsel %vm4489_vm4, %v1953_v5, %v1957_v9  ;;  %v2200_v59 = vld [vmem:[#allocation2 + $0x18] sm:$0xe]  ;;  %v2201_v0 = vld [vmem:[#allocation2 + $0x20] sm:$0xe] }
 0x192   : > { %v1976_v26 = vrot.slane %v1974_v15, 4  ;;  %v1979_v27 = vrot.slane %v1977_v17, 5  ;;  %v1993_v36 = vrot.slane %v1991_v28, 5  ;;  %v1999_v30 = vrot.slane %v1997_v37, 5  ;;  %v3802_v23 = vld [vmem:[%s5126_s3 + $0x10] sm:$0xf] }
 0x193   : > { %4079 = vmatmul.mubr.msk.bf16.vlgmr.msra.gmra.mrb[8].mxu0 %vm2015_vm8, %v3761_v18  ;;  %v1972_v34 = vsel %vm4489_vm4, %v1967_v25, %v1971_v19  ;;  %v1985_v41 = vrot.slane %v1983_v22, 5  ;;  %v3768_v45 = vcombine.low %v4697_v8, %v4754_v49  ;;  %v3769_v54 = vcombine.low %v4765_v60, %v4771_v1  ;;  %v3793_v49 = vld [vmem:[%s5126_s3 + $0xc] sm:$0xf] }
 0x194   : > { %v1980_v35 = vor.u32 %v1979_v27, %v1976_v26  ;;  %v3762_v38 = vcombine.low %v1958_v32, %v1972_v34  ;;  %v1994_v42 = vor.u32 %v1993_v36, %v1990_v33  ;;  %v2283_v6 = vsel %vm2028_vm7, %v3784_v47, 0  ;;  %v2478_v27 = vld [vmem:[#allocation2 + $0x10] sm:$0xf]  ;;  %v2476_v32 = vld [vmem:[#allocation2 + $0x8] sm:$0xf] }
 0x195   : > { %v3770_v8 = vcombine.low %v4784_v29, %v4803_v48  ;;  %v3776_v55 = vrot.slane %v2197_v52, 9  ;;  %v2226_v56 = vrot.slane %v4705_v21, 5  ;;  %v3777_v57 = vrot.slane %v2198_v24, 9  ;;  %v2199_v48 = vld [vmem:[#allocation2 + $0x10] sm:$0xe] }
 0x196   : > { %v1981_v39 = vrot.slane %v1980_v35, 4  ;;  %4082 = vmatprep.mubr.msk.bf16.mxu1 %vm2015_vm8, %v3762_v38  ;;  %v1995_v43 = vrot.slane %v1994_v42, 4  ;;  %v2230_v58 = vrot.slane %v4756_v50, 5  ;;  %v2202_v21 = vld [vmem:[#allocation2 + $0x28] sm:$0xe]  ;;  %v3771_v50 = vcombine.low %v4816_v10, %v4814_v4 }
 0x197   : > { %v2227_v1 = vsel %vm4862_vm11, %v3776_v55, %v2226_v56  ;;  %v3778_v62 = vrot.slane %v2199_v48, 9  ;;  %v2234_v63 = vrot.slane %v4777_v16, 5  ;;  %v2246_v2 = vrot.slane %v4805_v51, 5  ;;  %v2203_v10 = vld [vmem:[#allocation2 + $0x30] sm:$0xe] }
 0x198   : > { %v1986_v7 = vsel %vm4489_vm4, %v1981_v39, %v1985_v41  ;;  %v2000_v46 = vsel %vm4489_vm4, %v1995_v43, %v1999_v30  ;;  %v2231_v29 = vsel %vm4862_vm11, %v3777_v57, %v2230_v58  ;;  %v3781_v3 = vrot.slane %v2202_v21, 9  ;;  %v4380_v38 = vld [vmem:[#allocation2 + $0x8] ss:$8 sps:$4 sm:$0xff]   ;;  %v2482_v41 = vld [vmem:[#allocation2 + $0x20] sm:$0xf] }
 0x199   : > { %v3763_v31 = vcombine.low %v1986_v7, %v2000_v46  ;;  %v3785_v61 = vcombine.low %v2227_v1, %v2231_v29  ;;  %v3779_v5 = vrot.slane %v2200_v59, 9  ;;  %v2238_v9 = vrot.slane %v4780_v20, 5  ;;  %v2204_v20 = vld [vmem:[#allocation2 + $0x38] sm:$0xe]  ;;  %v2486_v42 = vld [vmem:[#allocation2 + $0x30] sm:$0xf] }
 0x19a   : > { %v2242_v12 = vrot.slane %v4798_v44, 5  ;;  %v3780_v13 = vrot.slane %v2201_v0, 9  ;;  %v2235_v4 = vsel %vm4862_vm11, %v3778_v62, %v2234_v63  ;;  %v2247_v16 = vsel %vm4862_vm11, %v3781_v3, %v2246_v2  ;;  %v2480_v30 = vld [vmem:[#allocation2 + $0x18] sm:$0xf]  ;;  %v4902_v46 = vld [vmem:[#allocation2 + $0x14] sm:$0x1] }
 0x19b   : > { %4083 = vmatmul.mubr.msk.bf16.vlgmr.msra.gmra.mrb[0].mxu1 %vm2015_vm8, %v3763_v31  ;;  %v2239_v51 = vsel %vm4862_vm11, %v3779_v5, %v2238_v9  ;;  %v2401_v17 = vsel %vm2028_vm7, %v3793_v49, 0  ;;  %v3782_v44 = vrot.slane %v2203_v10, 9  ;;  %v2250_v22 = vrot.slane %v4818_v11, 5  ;;  %v4381_v55 = vld [vmem:[#allocation2 + $0x18] ss:$8 sps:$4 sm:$0xff]  }
 0x19c   : > { %4087 = vmatpush3.bf16.msra.mxu1 %v2130_v53  ;;  %4088 = vmatprep.mubr.msk.bf16.mxu1 %vm2015_vm8, %v3768_v45  ;;  %v3786_v15 = vcombine.low %v2235_v4, %v2239_v51  ;;  %v2243_v18 = vsel %vm4862_vm11, %v3780_v13, %v2242_v12  ;;  %v3783_v25 = vrot.slane %v2204_v20, 9  ;;  %v2254_v26 = vrot.slane %v4822_v14, 5  ;;  %v2484_v45 = vld [vmem:[#allocation2 + $0x28] sm:$0xf]  ;;  %v4911_v48 = vld [vmem:[%s5126_s3 + $0x14] sm:$0xf] }
 0x19d   : > { %4334 = vmatprep.subr.msk.bf16.mxu1 %vm2028_vm7, %v3784_v47  ;;  %v3787_v19 = vcombine.low %v2243_v18, %v2247_v16  ;;  %v2251_v28 = vsel %vm4862_vm11, %v3782_v44, %v2250_v22  ;;  %v2507_v11 = vshrl.u32 %v2478_v27, 16  ;;  %v2510_v33 = vshll.u32 %v2478_v27, 16  ;;  %v4382_v29 = vld [vmem:[#allocation2 + $0x28] ss:$8 sps:$4 sm:$0xff]   ;;  %v2490_v0 = vld [vmem:[#allocation2 + $0x40] sm:$0xf] }
 0x19e   : > { %v2255_v34 = vsel %vm4862_vm11, %v3783_v25, %v2254_v26  ;;  %v2493_v36 = vshrl.u32 %v2476_v32, 16  ;;  %v2496_v37 = vshll.u32 %v2476_v32, 16  ;;  %v2535_v31 = vshrl.u32 %v2482_v41, 16  ;;  %v4916_v2 = vld [vmem:[#allocation2 + $0x24] sm:$0x1] }
 0x19f   : > { %v3788_v35 = vcombine.low %v2251_v28, %v2255_v34  ;;  %v2509_v39 = vrot.slane %v2507_v11, 4  ;;  %v2512_v14 = vrot.slane %v2510_v33, 5  ;;  %v2538_v53 = vshll.u32 %v2482_v41, 16  ;;  %v2488_v16 = vld [vmem:[#allocation2 + $0x38] sm:$0xf] }
 0x1a0   : > { %v2495_v7 = vrot.slane %v2493_v36, 4  ;;  %v2498_v43 = vrot.slane %v2496_v37, 5  ;;  %v2563_v52 = vshrl.u32 %v2486_v42, 16  ;;  %v2566_v24 = vshll.u32 %v2486_v42, 16  ;;  %v4920_v10 = vld [vmem:[#allocation2 + $0x1c] sm:$0x1] }
 0x1a1   : > { %v2513_v47 = vor.u32 %v2512_v14, %v2509_v39  ;;  %v2516_v57 = vshll.u32 %v4902_v46, 16  ;;  %v2549_v58 = vshrl.u32 %v2484_v45, 16  ;;  %v2552_v1 = vshll.u32 %v2484_v45, 16  ;;  %v4927_v25 = vld [vmem:[#allocation2 + $0x2c] sm:$0x1] }
 0x1a2   : > { %v2499_v56 = vor.u32 %v2498_v43, %v2495_v7  ;;  %v2537_v21 = vrot.slane %v2535_v31, 4  ;;  %v2565_v62 = vrot.slane %v2563_v52, 4  ;;  %v2568_v63 = vrot.slane %v2566_v24, 5  ;;  %v4383_v28 = vld [vmem:[#allocation2 + $0x38] ss:$8 sps:$4 sm:$0xff]  }
 0x1a3   : > { %4089 = vmatmul.mubr.msk.bf16.vlgmr.msra.gmra.mrb[4].mxu1 %vm2015_vm8, %v3769_v54  ;;  %v2631_v54 = vsel %vm2028_vm7, %v3802_v23, 0  ;;  %v2518_v12 = vrot.slane %v2516_v57, 5  ;;  %v2551_v13 = vrot.slane %v2549_v58, 4  ;;  %v2554_v4 = vrot.slane %v2552_v1, 5  ;;  %v2707_v57 = vld [vmem:[#allocation2 + $0x10] sm:$0xe] }
 0x1a4   : > { %4097 = vmatpush3.bf16.msra.mxu1 %v2283_v6  ;;  %4092 = vmatprep.mubr.msk.bf16.mxu1 %vm2015_vm8, %v3770_v8  ;;  %v4905_v6 = vld [vmem:[#allocation2 + $0xc] sm:$0x1]  ;;  %v2521_v8 = vshrl.u32 %v2480_v30, 16  ;;  %v2500_v9 = vrot.slane %v2499_v56, 4  ;;  %v2594_v18 = vshll.u32 %v2490_v0, 16  ;;  %v2569_v44 = vor.u32 %v2568_v63, %v2565_v62 }
 0x1a5   : > { %4335 = vmatprep.subr.msk.bf16.mxu1 %vm2028_vm7, %v3793_v49  ;;  %v2524_v49 = vshll.u32 %v2480_v30, 16  ;;  %v2502_v59 = vshll.u32 %v4905_v6, 16  ;;  %v2577_v26 = vshrl.u32 %v2488_v16, 16  ;;  %v2580_v27 = vshll.u32 %v2488_v16, 16  ;;  %v3828_v62 = vld [vmem:[%s5126_s3 + $0x18] sm:$0xf] }
 0x1a6   : > { %v2523_v3 = vrot.slane %v2521_v8, 4  ;;  %v2530_v11 = vshll.u32 %v4920_v10, 16  ;;  %v2555_v33 = vor.u32 %v2554_v4, %v2551_v13  ;;  %v2558_v39 = vshll.u32 %v4927_v25, 16  ;;  %v4942_v8 = vld [vmem:[#allocation2 + $0x3c] sm:$0x1] }
 0x1a7   : > { %v2526_v5 = vrot.slane %v2524_v49, 5  ;;  %v2504_v20 = vrot.slane %v2502_v59, 5  ;;  %v2570_v14 = vrot.slane %v2569_v44, 4  ;;  %v2579_v7 = vrot.slane %v2577_v26, 4  ;;  %v2709_v16 = vld [vmem:[#allocation2 + $0x20] sm:$0xe] }
 0x1a8   : > { %v2582_v43 = vrot.slane %v2580_v27, 5  ;;  %v2556_v30 = vrot.slane %v2555_v33, 4  ;;  %v2532_v45 = vrot.slane %v2530_v11, 5  ;;  %v2560_v24 = vrot.slane %v2558_v39, 5 }
 0x1a9   : > { %v2527_v22 = vor.u32 %v2526_v5, %v2523_v3  ;;  %v2505_v32 = vsel %vm4489_vm4, %v2500_v9, %v2504_v20  ;;  %v2789_v1 = vsel %vm2028_vm7, %v4911_v48, 0  ;;  %v3812_v63 = vrot.slane %v2707_v57, 9  ;;  %v2708_v20 = vld [vmem:[#allocation2 + $0x18] sm:$0xe] }
 0x1aa   : > { %v2732_v9 = vrot.slane %v4905_v6, 5  ;;  %v2744_v44 = vrot.slane %v4916_v2, 5  ;;  %v3813_v27 = vrot.slane %v2708_v20, 9  ;;  %v2748_v11 = vrot.slane %v4927_v25, 5 }
 0x1ab   : > { %4093 = vmatmul.mubr.msk.bf16.gmra.mrb[0].mxu1 %vm2015_vm8, %v3771_v50  ;;  %v2540_v50 = vrot.slane %v2538_v53, 5  ;;  %v2528_v41 = vrot.slane %v2527_v22, 4  ;;  %v4936_v53 = vld [vmem:[#allocation2 + $0x44] sm:$0x1]  ;;  %v2710_v22 = vld [vmem:[#allocation2 + $0x28] sm:$0xe] }
 0x1ac   : > { %4098 = vmatprep.mubr.msk.bf16.mxu1 %vm2015_vm8, %v3785_v61  ;;  %v2514_v61 = vrot.slane %v2513_v47, 4  ;;  %v2600_v56 = vshll.u32 %v4936_v53, 16  ;;  %v2760_v25 = vrot.slane %v4936_v53, 5 }
 0x1ad   : > { %v2541_v51 = vor.u32 %v2540_v50, %v2537_v21  ;;  %v2533_v49 = vsel %vm4489_vm4, %v2528_v41, %v2532_v45  ;;  %v2586_v50 = vshll.u32 %v4942_v8, 16 }
 0x1ae   : > { %v2602_v3 = vrot.slane %v2600_v56, 5  ;;  %v2991_v56 = vld [vmem:[#allocation2 + $0x30] sm:$0xf] }
 0x1af   : > { %v2542_v36 = vrot.slane %v2541_v51, 4  ;;  %v2711_v51 = vld [vmem:[#allocation2 + $0x30] sm:$0xe] }
 0x1b3   : > { %4099 = vmatmul.mubr.msk.bf16.vlgmr.msra.gmra.mrb[4].mxu1 %vm2015_vm8, %v3786_v15  ;;  %v4922_v15 = vld [vmem:[#allocation2 + $0x34] sm:$0x1] }
 0x1b4   : > { %4107 = vmatpush3.bf16.msra.mxu1 %v2401_v17  ;;  %4102 = vmatprep.mubr.msk.bf16.mxu1 %vm2015_vm8, %v3787_v19  ;;  %v2591_v17 = vshrl.u32 %v2490_v0, 16  ;;  %v2519_v19 = vsel %vm4489_vm4, %v2514_v61, %v2518_v12  ;;  %v2572_v34 = vshll.u32 %v4922_v15, 16  ;;  %v2706_v61 = vld [vmem:[#allocation2 + $0x8] sm:$0xe]  ;;  %v2736_v0 = vrot.slane %v4902_v46, 5 }
 0x1b5   : > { %4336 = vmatprep.subr.msk.bf16.mxu1 %vm2028_vm7, %v3802_v23  ;;  %v2544_v23 = vshll.u32 %v4916_v2, 16  ;;  %v3811_v5 = vrot.slane %v2706_v61, 9  ;;  %v2588_v12 = vrot.slane %v2586_v50, 5  ;;  %v2752_v26 = vrot.slane %v4922_v15, 5 }
 0x1b6   : > { %v2593_v37 = vrot.slane %v2591_v17, 4  ;;  %v2574_v31 = vrot.slane %v2572_v34, 5  ;;  %v2737_v4 = vsel %vm4862_vm11, %v3812_v63, %v2736_v0  ;;  %v2713_v34 = vld [vmem:[#allocation2 + $0x40] sm:$0xe]  ;;  %v2908_v15 = vsel %vm2028_vm7, %v3828_v62, 0 }
 0x1b7   : > { %v2546_v42 = vrot.slane %v2544_v23, 5  ;;  %v3816_v23 = vrot.slane %v2711_v51, 9  ;;  %v3818_v39 = vrot.slane %v2713_v34, 9  ;;  %v3059_v63 = vshll.u32 %v2991_v56, 16  ;;  %v2997_v0 = vld [vmem:[#allocation2 + $0x48] sm:$0xf] }
 0x1b8   : > { %v4386_v51 = vld [vmem:[#allocation2 + $0x30] ss:$8 sps:$4 sm:$0xff]  }
 0x1b9   : > { %v2547_v47 = vsel %vm4489_vm4, %v2542_v36, %v2546_v42  ;;  %v2753_v2 = vsel %vm4862_vm11, %v3816_v23, %v2752_v26  ;;  %v2756_v42 = vrot.slane %v4942_v8, 5  ;;  %v2995_v23 = vld [vmem:[#allocation2 + $0x40] sm:$0xf] }
 0x1ba   : > { %v3804_v58 = vcombine.low %v2533_v49, %v2547_v47 }
 0x1bb   : > { %4103 = vmatmul.mubr.msk.bf16.gmra.mrb[0].mxu1 %vm2015_vm8, %v3788_v35  ;;  %v3803_v35 = vcombine.low %v2505_v32, %v2519_v19  ;;  %v3814_v19 = vrot.slane %v2709_v16, 9  ;;  %v3815_v32 = vrot.slane %v2710_v22, 9  ;;  %v3061_v22 = vrot.slane %v3059_v63, 5 }
 0x1bc   : > { %4108 = vmatprep.mubr.msk.bf16.mxu1 %vm2015_vm8, %v4380_v38  ;;  %v2596_v38 = vrot.slane %v2594_v18, 5  ;;  %v2733_v18 = vsel %vm4862_vm11, %v3811_v5, %v2732_v9 }
 0x1bd   : > { %v3820_v6 = vcombine.low %v2733_v18, %v2737_v4  ;;  %v2745_v33 = vsel %vm4862_vm11, %v3814_v19, %v2744_v44 }
 0x1be   : > { %v2597_v52 = vor.u32 %v2596_v38, %v2593_v37  ;;  %v2749_v37 = vsel %vm4862_vm11, %v3815_v32, %v2748_v11  ;;  %v3101_v32 = vshll.u32 %v2997_v0, 16 }
 0x1bf   : > { %v3822_v38 = vcombine.low %v2749_v37, %v2753_v2  ;;  %v5013_v2 = vld [vmem:[#allocation2 + $0x2c] sm:$0x1]  ;;  %v5017_v37 = vld [vmem:[#allocation2 + $0x34] sm:$0x1] }
 0x1c0   : > { %v2598_v59 = vrot.slane %v2597_v52, 4  ;;  %v3255_v40 = vrot.slane %v5017_v37, 5 }
 0x1c2   : > { %v2603_v13 = vsel %vm4489_vm4, %v2598_v59, %v2602_v3  ;;  %v2993_v59 = vld [vmem:[#allocation2 + $0x38] sm:$0xf]  ;;  %v5000_v3 = vld [vmem:[#allocation2 + $0x1c] sm:$0x1] }
 0x1c3   : > { %4109 = vmatmul.mubr.msk.bf16.vlgmr.msra.gmra.mrb[4].mxu1 %vm2015_vm8, %v4381_v55  ;;  %v2583_v55 = vor.u32 %v2582_v43, %v2579_v7  ;;  %v2983_v7 = vld [vmem:[#allocation2 + $0x10] sm:$0xf]  ;;  %v2761_v43 = vsel %vm4862_vm11, %v3818_v39, %v2760_v25  ;;  %v3070_v16 = vshrl.u32 %v2993_v59, 16  ;;  %v3023_v19 = vshll.u32 %v5000_v3, 16 }
 0x1c4   : > { %4117 = vmatpush3.bf16.msra.mxu1 %v2631_v54  ;;  %4112 = vmatprep.mubr.msk.bf16.mxu1 %vm2015_vm8, %v4382_v29  ;;  %v2575_v54 = vsel %vm4489_vm4, %v2570_v14, %v2574_v31  ;;  %v2561_v29 = vsel %vm4489_vm4, %v2556_v30, %v2560_v24  ;;  %v3837_v14 = vld [vmem:[%s5126_s3 + $0x1c] sm:$0xf]  ;;  %v2985_v30 = vld [vmem:[#allocation2 + $0x18] sm:$0xf]  ;;  %v3000_v31 = vshrl.u32 %v2983_v7, 16  ;;  %v3003_v53 = vshll.u32 %v2983_v7, 16 }
 0x1c5   : > { %4337 = vmatprep.subr.msk.bf16.mxu1 %vm2028_vm7, %v4911_v48  ;;  %v3805_v21 = vcombine.low %v2561_v29, %v2575_v54  ;;  %v2584_v48 = vrot.slane %v2583_v55, 4  ;;  %v3014_v52 = vshrl.u32 %v2985_v30, 16  ;;  %v3017_v24 = vshll.u32 %v2985_v30, 16  ;;  %v4384_v54 = vld [vmem:[#allocation2 + $0x10] ss:$8 sps:$4 sm:$0xff]  }
 0x1c6   : > { %v3002_v49 = vrot.slane %v3000_v31, 4  ;;  %v3005_v8 = vrot.slane %v3003_v53, 5  ;;  %v2989_v55 = vld [vmem:[#allocation2 + $0x28] sm:$0xf]  ;;  %v4997_v29 = vld [vmem:[#allocation2 + $0x14] sm:$0x1] }
 0x1c7   : > { %v2589_v46 = vsel %vm4489_vm4, %v2584_v48, %v2588_v12  ;;  %v3016_v57 = vrot.slane %v3014_v52, 4  ;;  %v3045_v50 = vshll.u32 %v2989_v55, 16  ;;  %v3138_v48 = vsel %vm2028_vm7, %v3837_v14, 0  ;;  %v4385_v12 = vld [vmem:[#allocation2 + $0x20] ss:$8 sps:$4 sm:$0xff]  }
 0x1c8   : > { %v3806_v17 = vcombine.low %v2589_v46, %v2603_v13  ;;  %v3006_v61 = vor.u32 %v3005_v8, %v3002_v49  ;;  %v3009_v13 = vshll.u32 %v4997_v29, 16  ;;  %v3073_v46 = vshll.u32 %v2993_v59, 16  ;;  %v5022_v7 = vld [vmem:[#allocation2 + $0x3c] sm:$0x1]  ;;  %v4387_v31 = vld [vmem:[#allocation2 + $0x40] ss:$8 sps:$4 sm:$0xff]  }
 0x1c9   : > { %v3047_v20 = vrot.slane %v3045_v50, 5  ;;  %v3072_v34 = vrot.slane %v3070_v16, 4  ;;  %v3025_v25 = vrot.slane %v3023_v19, 5  ;;  %v3103_v30 = vrot.slane %v3101_v32, 5  ;;  %v5031_v50 = vld [vmem:[#allocation2 + $0x44] sm:$0x1] }
 0x1ca   : > { %v3011_v11 = vrot.slane %v3009_v13, 5  ;;  %v5033_v59 = vld [vmem:[#allocation2 + $0x4c] sm:$0x1]  ;;  %v3093_v13 = vshll.u32 %v5031_v50, 16 }
 0x1cb   : > { %4113 = vmatmul.mubr.msk.bf16.gmra.mrb[0].mxu1 %vm2015_vm8, %v4383_v28  ;;  %v2740_v28 = vrot.slane %v4920_v10, 5  ;;  %v2712_v10 = vld [vmem:[#allocation2 + $0x38] sm:$0xe] }
 0x1cc   : > { %4118 = vmatprep.mubr.msk.bf16.mxu1 %vm2015_vm8, %v3803_v35  ;;  %v3817_v41 = vrot.slane %v2712_v10, 9  ;;  %v3084_v10 = vshrl.u32 %v2995_v23, 16 }
 0x1cd   : > { %v2741_v35 = vsel %vm4862_vm11, %v3813_v27, %v2740_v28  ;;  %v3098_v28 = vshrl.u32 %v2997_v0, 16 }
 0x1ce   : > { %v3821_v36 = vcombine.low %v2741_v35, %v2745_v33  ;;  %v2757_v45 = vsel %vm4862_vm11, %v3817_v41, %v2756_v42  ;;  %v3075_v35 = vrot.slane %v3073_v46, 5  ;;  %v3051_v42 = vshll.u32 %v5013_v2, 16 }
 0x1cf   : > { %v3823_v47 = vcombine.low %v2757_v45, %v2761_v43  ;;  %v3100_v43 = vrot.slane %v3098_v28, 4  ;;  %v3086_v49 = vrot.slane %v3084_v10, 4  ;;  %v3243_v28 = vrot.slane %v5000_v3, 5  ;;  %v3215_v10 = vld [vmem:[#allocation2 + $0x20] sm:$0xe] }
 0x1d0   : > { %v3076_v52 = vor.u32 %v3075_v35, %v3072_v34  ;;  %v3216_v34 = vld [vmem:[#allocation2 + $0x28] sm:$0xe] }
 0x1d1   : > { %v3849_v3 = vrot.slane %v3216_v34, 9 }
 0x1d3   : > { %4119 = vmatmul.mubr.msk.bf16.vlgmr.msra.gmra.mrb[4].mxu1 %vm2015_vm8, %v3804_v58  ;;  %v3019_v58 = vrot.slane %v3017_v24, 5 }
 0x1d4   : > { %4127 = vmatpush3.bf16.msra.mxu1 %v2789_v1  ;;  %4122 = vmatprep.mubr.msk.bf16.mxu1 %vm2015_vm8, %v3805_v21  ;;  %v2987_v1 = vld [vmem:[#allocation2 + $0x20] sm:$0xf]  ;;  %v3042_v21 = vshrl.u32 %v2989_v55, 16 }
 0x1d5   : > { %4338 = vmatprep.subr.msk.bf16.mxu1 %vm2028_vm7, %v3828_v62  ;;  %v3056_v62 = vshrl.u32 %v2991_v56, 16  ;;  %v3028_v5 = vshrl.u32 %v2987_v1, 16  ;;  %v3031_v9 = vshll.u32 %v2987_v1, 16  ;;  %v3020_v4 = vor.u32 %v3019_v58, %v3016_v57 }
 0x1d6   : > { %v3044_v18 = vrot.slane %v3042_v21, 4  ;;  %v3079_v56 = vshll.u32 %v5022_v7, 16  ;;  %v3053_v58 = vrot.slane %v3051_v42, 5  ;;  %v3077_v21 = vrot.slane %v3076_v52, 4 }
 0x1d7   : > { %v3058_v44 = vrot.slane %v3056_v62, 4  ;;  %v3030_v26 = vrot.slane %v3028_v5, 4  ;;  %v3033_v27 = vrot.slane %v3031_v9, 5  ;;  %v3021_v33 = vrot.slane %v3020_v4, 4  ;;  %v3213_v4 = vld [vmem:[#allocation2 + $0x10] sm:$0xe] }
 0x1d8   : > { %v3081_v9 = vrot.slane %v3079_v56, 5 }
 0x1d9   : > { %v3034_v41 = vor.u32 %v3033_v27, %v3030_v26  ;;  %v3026_v53 = vsel %vm4489_vm4, %v3021_v33, %v3025_v25  ;;  %v3239_v26 = vrot.slane %v4997_v29, 5  ;;  %v3217_v29 = vld [vmem:[#allocation2 + $0x30] sm:$0xe]  ;;  %v3218_v25 = vld [vmem:[#allocation2 + $0x38] sm:$0xe] }
 0x1db   : > { %4123 = vmatmul.mubr.msk.bf16.gmra.mrb[0].mxu1 %vm2015_vm8, %v3806_v17  ;;  %v5006_v17 = vld [vmem:[%s5126_s3 + $0x20] sm:$0xf]  ;;  %v3035_v57 = vrot.slane %v3034_v41, 4  ;;  %v3848_v41 = vrot.slane %v3215_v10, 9 }
 0x1dc   : > { %4128 = vmatprep.mubr.msk.bf16.mxu1 %vm2015_vm8, %v3820_v6  ;;  %v3007_v6 = vrot.slane %v3006_v61, 4  ;;  %v3104_v61 = vor.u32 %v3103_v30, %v3100_v43  ;;  %v3296_v46 = vsel %vm2028_vm7, %v5006_v17, 0  ;;  %v3851_v43 = vrot.slane %v3218_v25, 9 }
 0x1dd   : > { %v3259_v30 = vrot.slane %v5022_v7, 5 }
 0x1de   : > { %v3012_v39 = vsel %vm4489_vm4, %v3007_v6, %v3011_v11 }
 0x1df   : > { %v3838_v24 = vcombine.low %v3012_v39, %v3026_v53  ;;  %v3251_v39 = vrot.slane %v5013_v2, 5  ;;  %v3220_v53 = vld [vmem:[#allocation2 + $0x48] sm:$0xe] }
 0x1e0   : > { %v3853_v7 = vrot.slane %v3220_v53, 9 }
 0x1e3   : > { %4129 = vmatmul.mubr.msk.bf16.vlgmr.msra.gmra.mrb[4].mxu1 %vm2015_vm8, %v3821_v36  ;;  %v5015_v36 = vld [vmem:[#allocation2 + $0x24] sm:$0x1] }
 0x1e4   : > { %4137 = vmatpush3.bf16.msra.mxu1 %v2908_v15  ;;  %4132 = vmatprep.mubr.msk.bf16.mxu1 %vm2015_vm8, %v3822_v38  ;;  %v3048_v15 = vor.u32 %v3047_v20, %v3044_v18  ;;  %v3087_v38 = vshll.u32 %v2995_v23, 16  ;;  %v3037_v45 = vshll.u32 %v5015_v36, 16  ;;  %v3105_v18 = vrot.slane %v3104_v61, 4 }
 0x1e5   : > { %4339 = vmatprep.subr.msk.bf16.mxu1 %vm2028_vm7, %v3837_v14  ;;  %v3062_v14 = vor.u32 %v3061_v22, %v3058_v44  ;;  %v3214_v44 = vld [vmem:[#allocation2 + $0x18] sm:$0xe]  ;;  %v3394_v22 = vld [vmem:[%s5128_s5] sm:$0x3]  ;;  %v3846_v23 = vrot.slane %v3213_v4, 9  ;;  %v3247_v42 = vrot.slane %v5015_v36, 5  ;;  %v3260_v36 = vsel %vm4862_vm11, %v3851_v43, %v3259_v30 }
 0x1e6   : > { %v3089_v8 = vrot.slane %v3087_v38, 5  ;;  %v3039_v62 = vrot.slane %v3037_v45, 5  ;;  %v3847_v27 = vrot.slane %v3214_v44, 9  ;;  %v3219_v45 = vld [vmem:[#allocation2 + $0x40] sm:$0xe]  ;;  %v3428_v52 = vsel %vm306_vm0, %v3394_v22, 0 }
 0x1e7   : > { %v3063_v55 = vrot.slane %v3062_v14, 4  ;;  %v3240_v33 = vsel %vm4862_vm11, %v3846_v23, %v3239_v26  ;;  %v3850_v14 = vrot.slane %v3217_v29, 9 }
 0x1e8   : > { %v3090_v0 = vor.u32 %v3089_v8, %v3086_v49  ;;  %v3263_v49 = vrot.slane %v5031_v50, 5  ;;  %v3267_v8 = vrot.slane %v5033_v59, 5  ;;  %v4391_v50 = vld [vmem:[%s4459_s30 + $0x108] ss:$8 sps:$4 sm:$0xff]  }
 0x1e9   : > { %v3256_v2 = vsel %vm4862_vm11, %v3850_v14, %v3255_v40 }
 0x1ea   : > { %v3091_v6 = vrot.slane %v3090_v0, 4  ;;  %v3268_v56 = vsel %vm4862_vm11, %v3853_v7, %v3267_v8 }
 0x1eb   : > { %4133 = vmatmul.mubr.msk.bf16.gmra.mrb[0].mxu1 %vm2015_vm8, %v3823_v47  ;;  %v3065_v47 = vshll.u32 %v5017_v37, 16  ;;  %v3248_v37 = vsel %vm4862_vm11, %v3848_v41, %v3247_v42 }
 0x1ec   : > { %4138 = vmatprep.mubr.msk.bf16.mxu1 %vm2015_vm8, %v4384_v54  ;;  %v3049_v54 = vrot.slane %v3048_v15, 4  ;;  %v3244_v15 = vsel %vm4862_vm11, %v3847_v27, %v3243_v28 }
 0x1ed   : > { %v3067_v1 = vrot.slane %v3065_v47, 5  ;;  %v3855_v38 = vcombine.low %v3240_v33, %v3244_v15 }
 0x1ee   : > { %v3054_v63 = vsel %vm4489_vm4, %v3049_v54, %v3053_v58  ;;  %v3852_v54 = vrot.slane %v3219_v45, 9 }
 0x1ef   : > { %v3068_v5 = vsel %vm4489_vm4, %v3063_v55, %v3067_v1  ;;  %v4389_v1 = vld [vmem:[%s4459_s30 + $0xe8] ss:$8 sps:$4 sm:$0xff]  }
 0x1f0   : > { %v3264_v55 = vsel %vm4862_vm11, %v3852_v54, %v3263_v49 }
 0x1f1   : > { %v3858_v58 = vcombine.low %v3264_v55, %v3268_v56 }
 0x1f3   : > { %4139 = vmatmul.mubr.msk.bf16.vlgmr.msra.gmra.mrb[4].mxu1 %vm2015_vm8, %v4385_v12  ;;  %v3040_v12 = vsel %vm4489_vm4, %v3035_v57, %v3039_v62  ;;  %v4388_v57 = vld [vmem:[%s4459_s30 + $0xd8] ss:$8 sps:$4 sm:$0xff]  }
 0x1f4   : > { %4147 = vmatpush3.bf16.msra.mxu1 %v3138_v48  ;;  %4142 = vmatprep.mubr.msk.bf16.mxu1 %vm2015_vm8, %v4386_v51  ;;  %v3107_v48 = vshll.u32 %v5033_v59, 16  ;;  %v3839_v16 = vcombine.low %v3040_v12, %v3054_v63  ;;  %v3082_v51 = vsel %vm4489_vm4, %v3077_v21, %v3081_v9  ;;  %v4390_v21 = vld [vmem:[%s4459_s30 + $0xf8] ss:$8 sps:$4 sm:$0xff]  }
 0x1f5   : > { %4340 = vmatprep.subr.msk.bf16.mxu1 %vm2028_vm7, %v5006_v17  ;;  %v3840_v20 = vcombine.low %v3068_v5, %v3082_v51  ;;  %v3095_v17 = vrot.slane %v3093_v13, 5  ;;  %v3863_v63 = vld [vmem:[%s5127_s4] ss:$0 sm:$0xff] }
 0x1f6   : > { %v3109_v19 = vrot.slane %v3107_v48, 5 }
 0x1f7   : > { %v3096_v32 = vsel %vm4489_vm4, %v3091_v6, %v3095_v17 }
 0x1f8   : > { %v3110_v11 = vsel %vm4489_vm4, %v3105_v18, %v3109_v19 }
 0x1f9   : > { %v3841_v35 = vcombine.low %v3096_v32, %v3110_v11 }
 0x1fb   : > { %4143 = vmatmul.mubr.msk.bf16.gmra.mrb[0].mxu1 %vm2015_vm8, %v4387_v31  ;;  %v3252_v31 = vsel %vm4862_vm11, %v3849_v3, %v3251_v39 }
 0x1fc   : > { %4148 = vmatprep.mubr.msk.bf16.mxu1 %vm2015_vm8, %v3838_v24  ;;  %v3856_v47 = vcombine.low %v3248_v37, %v3252_v31  ;;  %v3857_v24 = vcombine.low %v3256_v2, %v3260_v36 }
 0x203   : > { %4149 = vmatmul.mubr.msk.bf16.vlgmr.msra.gmra.mrb[4].mxu1 %vm2015_vm8, %v3839_v16 }
 0x204   : > { %4157 = vmatpush3.bf16.msra.mxu1 %v3296_v46  ;;  %4152 = vmatprep.mubr.msk.bf16.mxu1 %vm2015_vm8, %v3840_v20 }
 0x205   : > { %4341 = vmatprep.subr.msk.bf16.mxu1 %vm306_vm0, %v3394_v22 }
 0x20b   : > { %4153 = vmatmul.mubr.msk.bf16.gmra.mrb[0].mxu1 %vm2015_vm8, %v3841_v35 }
 0x20c   : > { %4158 = vmatprep.mubr.msk.bf16.mxu1 %vm2015_vm8, %v3855_v38 }
 0x213   : > { %4159 = vmatmul.mubr.msk.bf16.vlgmr.msra.gmra.mrb[4].mxu1 %vm2015_vm8, %v3856_v47 }
 0x214   : > { %4167 = vmatpush3.bf16.msra.mxu1 %v3428_v52  ;;  %4162 = vmatprep.mubr.msk.bf16.mxu1 %vm2015_vm8, %v3857_v24 }
 0x21b   : > { %4163 = vmatmul.mubr.msk.bf16.gmra.mrb[0].mxu1 %vm2015_vm8, %v3858_v58 }
 0x21c   : > { %4168 = vmatprep.mubr.msk.bf16.mxu1 %vm293_vm1, %v4388_v57 }
 0x223   : > { %4169 = vmatmul.mubr.msk.bf16.vlgmr.msra.gmra.mrb[4].mxu1 %vm293_vm1, %v4389_v1 }
 0x224   : > { %4172 = vmatprep.mubr.msk.bf16.mxu1 %vm293_vm1, %v4390_v21 }
 0x22b   : > { %4173 = vmatmul.mubr.msk.bf16.gmra.mrb[0].mxu1 %vm293_vm1, %v4391_v50 }
 0x266   : > { %v4080_v59 = vpop.f32.mrb[8].mxu0 }
 0x267   : > { %v2066_v61 = vpop.f32.mrb[9].mxu0  ;;  %v4178_v0 = vadd.f32 %v4080_v59, %v3863_v63 }
 0x268   : > { %v4081_v60 = vpop.f32.mrb[10].mxu0  ;;  %v4180_v48 = vadd.f32 %v3863_v63, %v2066_v61 }
 0x269   : > { %v2069_v62 = vpop.f32.mrb[11].mxu0  ;;  %v4182_v9 = vadd.f32 %v4081_v60, %v3863_v63 }
 0x26a   : > { %v4184_v4 = vadd.f32 %v3863_v63, %v2069_v62 }
 0x2f6   : > { %v4170_v5 = vpop.f32.mrb[4].mxu1 }
 0x2f7   : > { %v4179_v12 = vadd.f32 %v4178_v0, %v4170_v5  ;;  %v3464_v13 = vpop.f32.mrb[5].mxu1 }
 0x2f8   : > { %v4181_v16 = vadd.f32 %v4180_v48, %v3464_v13  ;;  %v4171_v46 = vpop.f32.mrb[6].mxu1 }
 0x2f9   : > { %vm3505_vm0 = vcmp.ge.f32.partialorder %v4179_v12, 0.0  ;;  %v3513_v51 = vmul.f32 0.01, %v4179_v12  ;;  %v4183_v18 = vadd.f32 %v4182_v9, %v4171_v46  ;;  %v3467_v20 = vpop.f32.mrb[7].mxu1 }
 0x2fa   : > { %vm3503_vm1 = vcmp.ge.f32.partialorder %v4181_v16, 0.0  ;;  %v3511_v6 = vmul.f32 0.01, %v4181_v16  ;;  %v4185_v19 = vadd.f32 %v4184_v4, %v3467_v20 }
 0x2fb   : > { %v3521_v44 = vsel %vm3505_vm0, %v4179_v12, %v3513_v51  ;;  %vm3506_vm4 = vcmp.ge.f32.partialorder %v4183_v18, 0.0  ;;  %v3514_v22 = vmul.f32 0.01, %v4183_v18 }
 0x2fc   : > { %3529 = vst.msk [vmem:[%s5102_s28 + $0x10] sm:$0xff] %vm2015_vm8, %v3521_v44  ;;  %v3519_v23 = vsel %vm3503_vm1, %v4181_v16, %v3511_v6  ;;  %vm3504_vm7 = vcmp.ge.f32.partialorder %v4185_v19, 0.0  ;;  %v3512_v26 = vmul.f32 0.01, %v4185_v19 }
 0x2fd   : > { %3527 = vst.msk [vmem:[%s5102_s28] sm:$0xff] %vm2015_vm8, %v3519_v23  ;;  %v3522_v17 = vsel %vm3506_vm4, %v4183_v18, %v3514_v22 }
 0x2fe   : > { %3530 = vst.msk [vmem:[%s5102_s28 + $0x18] sm:$0xff] %vm2015_vm8, %v3522_v17  ;;  %v3520_v27 = vsel %vm3504_vm7, %v4185_v19, %v3512_v26  ;;  %v4174_v28 = vpop.f32.mrb[0].mxu1 }
 0x2ff   : > { %3528 = vst.msk [vmem:[%s5102_s28 + $0x8] sm:$0xff] %vm2015_vm8, %v3520_v27  ;;  %v4186_v32 = vadd.f32 %v4174_v28, %v3863_v63  ;;  %v3480_v11 = vpop.f32.mrb[1].mxu1 }
 0x300   : > { %v4187_v33 = vadd.f32 %v3863_v63, %v3480_v11  ;;  %v4175_v34 = vpop.f32.mrb[2].mxu1 }
 0x301   : > { %vm3509_vm12 = vcmp.ge.f32.partialorder %v4186_v32, 0.0  ;;  %v3517_v29 = vmul.f32 0.01, %v4186_v32  ;;  %v4188_v35 = vadd.f32 %v4175_v34, %v3863_v63  ;;  %v3483_v15 = vpop.f32.mrb[3].mxu1 }
 0x302   : > { %vm3507_vm13 = vcmp.ge.f32.partialorder %v4187_v33, 0.0  ;;  %v3515_v10 = vmul.f32 0.01, %v4187_v33  ;;  %v4189_v38 = vadd.f32 %v3863_v63, %v3483_v15 }
 0x303   : > { %v3525_v3 = vsel %vm3509_vm12, %v4186_v32, %v3517_v29  ;;  %vm3510_vm14 = vcmp.ge.f32.partialorder %v4188_v35, 0.0  ;;  %v3518_v39 = vmul.f32 0.01, %v4188_v35 }
 0x304   : > { %3533 = vst.msk [vmem:[%s5102_s28 + $0x30] sm:$0xff] %vm2015_vm8, %v3525_v3  ;;  %v3523_v25 = vsel %vm3507_vm13, %v4187_v33, %v3515_v10  ;;  %vm3508_vm15 = vcmp.ge.f32.partialorder %v4189_v38, 0.0  ;;  %v3516_v14 = vmul.f32 0.01, %v4189_v38 }
 0x305   : > { %3531 = vst.msk [vmem:[%s5102_s28 + $0x20] sm:$0xff] %vm2015_vm8, %v3523_v25  ;;  %v3526_v40 = vsel %vm3510_vm14, %v4188_v35, %v3518_v39 }
 0x306   : > { %3534 = vst.msk [vmem:[%s5102_s28 + $0x38] sm:$0xff] %vm2015_vm8, %v3526_v40  ;;  %v3524_v41 = vsel %vm3508_vm15, %v4189_v38, %v3516_v14 }
 0x307   : > { %3532 = vst.msk [vmem:[%s5102_s28 + $0x28] sm:$0xff] %vm2015_vm8, %v3524_v41 }
 0x308 PF: > { %s16_s21 = sadd.s32 1, %s4398_s21  }
 0x309   : > { %p13_p4 = scmp.ge.s32.totalorder %s16_s21, 4  }
 0x30b   :  { %15 = sbr.rel (!%p13_p4) target bundleno = 1 (0x1), region = 97 }

</bundles_post_ra>
